<compile_context>
chip_gen: v7x
topology: tpu7x:2x2x1
jax: 0.10.0
libtpu: 0.0.40
codegen_flags: <defaults>
</compile_context>

<pallas_src>
import jax
import jax.numpy as jnp
import numpy as np
from jax.experimental import pallas as pl
from jax.experimental.pallas import tpu as pltpu

N, H, W, C, C2 = 2, 14, 14, 256, 512   # shapes implied by AvgPool2d(14)/(7)
HW = H * W
EPS = 1e-5


def _make_kernel(blk):
    """Kernel processing `blk` samples per grid step (static Python unroll)."""

    def attention_branch_kernel(h_ref,       # (blk, C, HW) bf16  resnet_pre features
                                wext_ref,    # (1, C)  bf16  BN256-folded extractor weight
                                wpost_ref,   # (C, C2) bf16  BN512/HW-folded post weight
                                bpost_ref,   # (1, C2) f32   BN512-folded bias
                                sc_ref,      # SMEM (8,) [b_ext,k_att,c_att,w0,w1,b0,b1,0]
                                out_ref,     # (blk, 1, C2) perception branch output
                                attout_ref,  # (blk, 1, 2)  attention classifier output
                                attmap_ref   # (blk, 1, HW) visualization attention map
                                ):
        b_ext = sc_ref[0]
        k_att = sc_ref[1]
        c_att = sc_ref[2]
        idx = jax.lax.broadcasted_iota(jnp.int32, (1, 2), 1)
        w_sel = jnp.where(idx == 0, sc_ref[3], sc_ref[4])       # Linear(1,2).weight
        b_sel = jnp.where(idx == 0, sc_ref[5], sc_ref[6])       # Linear(1,2).bias

        for b in range(blk):                                     # static unroll (1 or 2)
            h = h_ref[b]                                         # (C, HW) bf16 == identity

            # ---- extractor: (folded) BatchNorm2d(256) + Conv2d(256, 1, 1) ----
            e = jnp.dot(wext_ref[...], h,
                        preferred_element_type=jnp.float32) + b_ext       # (1, HW)

            # ---- attentionbranch2attentionmechanism (folded conv+BN):
            #      ReLU -> affine -> Sigmoid ----
            att = jax.nn.sigmoid(jnp.maximum(e, 0.0) * k_att + c_att)      # (1, HW)
            attmap_ref[b] = att                                            # viz att map

            # ---- h = h*identity ; h = h+identity ; global pool -> fused matvec ----
            # pooled_row[c] = sum_p (att_p + 1) * h[c, p]   (1/HW folded into wpost)
            pooled = jax.lax.dot_general(
                (att + 1.0).astype(jnp.bfloat16), h,
                dimension_numbers=(((1,), (1,)), ((), ())),
                preferred_element_type=jnp.float32)                        # (1, C)

            # ---- perception_branch: (folded) resnet_post 1x1-conv stand-in + BN1d ----
            # TODO(synk): resnet_post is an external pretrained resnet18 tail; replaced
            # by a deterministic 1x1-conv (256->512) stand-in + global spatial mean.
            out_ref[b] = (jnp.dot(pooled.astype(jnp.bfloat16), wpost_ref[...],
                                  preferred_element_type=jnp.float32)
                          + bpost_ref[...])                                # (1, C2)

            # ---- attentionbranch2classifier: AvgPool2d(14), Linear(1,2), Softmax ----
            s = jnp.mean(e, axis=1, keepdims=True)                         # (1, 1)
            logits = s * w_sel + b_sel                                     # (1, 2)
            mx = jnp.max(logits, axis=-1, keepdims=True)
            ex = jnp.exp(logits - mx)
            attout_ref[b] = ex * pl.reciprocal(
                jnp.sum(ex, axis=-1, keepdims=True), approx=True)

    return attention_branch_kernel


def fold_params(p):
    """Fold the BatchNorms / scalar chains into conv weights (inference mode)."""
    g, b, m, v = p["bn256"]                                   # each (C,)
    s256 = g * jax.lax.rsqrt(v + EPS)
    w_ext = p["w_ext"][:, 0]                                  # (C,)
    sc = p["scalars"][0]   # [b_ext, w_att, b_att, bn1_g, bn1_b, bn1_m, bn1_v, 0]
    b_ext = sc[0] + jnp.sum((b - m * s256) * w_ext)           # scalar
    w_ext_row = (w_ext * s256)[None, :].astype(jnp.bfloat16)  # (1, C) bf16

    s1 = sc[3] * jax.lax.rsqrt(sc[6] + EPS)
    k_att = sc[1] * s1
    c_att = (sc[2] - sc[5]) * s1 + sc[4]

    g5, b5, m5, v5 = p["bn512"]
    s512 = g5 * jax.lax.rsqrt(v5 + EPS)
    # fold BN512 scale AND the 1/HW spatial-mean factor into the (C, C2) weight
    w_post = (p["w_post"] * s512[None, :] * (1.0 / HW)).astype(jnp.bfloat16)  # (C, C2)
    b_post = (b5 - m5 * s512)[None, :].astype(jnp.float32)                    # (1, C2)

    w_cls = p["w_cls"]                                        # row0=weight, row1=bias
    scalars = jnp.stack([b_ext, k_att, c_att,
                         w_cls[0, 0], w_cls[0, 1], w_cls[1, 0], w_cls[1, 1],
                         jnp.zeros((), jnp.float32)]).astype(jnp.float32)     # (8,)
    return w_ext_row, w_post, b_post, scalars


def attention_branch_forward(feat_nchw, params):
    """feat_nchw: (N, 256, 14, 14) resnet_pre output in torch NCHW layout."""
    n = feat_nchw.shape[0]
    h = feat_nchw.reshape(n, C, HW).astype(jnp.bfloat16)      # no transpose needed
    w_ext_row, w_post, b_post, scalars = fold_params(params)

    # Dual-TC chips (v7x): one sample per grid step, "parallel" shards across cores.
    # Single-TC chips (v5e/v6e): batch all samples into one grid step.
    kind = jax.devices()[0].device_kind.lower()
    two_tc = ("v7" in kind) or ("7x" in kind)
    blk = (n // 2) if (two_tc and n > 1 and n % 2 == 0) else n
    steps = n // blk

    grid_spec = pltpu.PrefetchScalarGridSpec(
        num_scalar_prefetch=0,
        grid=(steps,),
        in_specs=[
            pl.BlockSpec((blk, C, HW), lambda i: (i, 0, 0)),  # features (bf16)
            pl.BlockSpec((1, C), lambda i: (0, 0)),           # folded extractor weight
            pl.BlockSpec((C, C2), lambda i: (0, 0)),          # folded post weight (bf16)
            pl.BlockSpec((1, C2), lambda i: (0, 0)),          # folded BN512 bias
            pl.BlockSpec(memory_space=pltpu.MemorySpace.SMEM),  # folded scalars + cls
        ],
        out_specs=[
            pl.BlockSpec((blk, 1, C2), lambda i: (i, 0, 0)),  # lane-dense perception out
            pl.BlockSpec((blk, 1, 2), lambda i: (i, 0, 0)),
            pl.BlockSpec((blk, 1, HW), lambda i: (i, 0, 0)),
        ],
    )

    out_row, att_outputs, att_map = pl.pallas_call(
        _make_kernel(blk),
        grid_spec=grid_spec,
        out_shape=(
            jax.ShapeDtypeStruct((n, 1, C2), jnp.float32),
            jax.ShapeDtypeStruct((n, 1, 2), jnp.float32),
            jax.ShapeDtypeStruct((n, 1, HW), jnp.float32),
        ),
        compiler_params=pltpu.CompilerParams(dimension_semantics=("parallel",)),
    )(h, w_ext_row, w_post, b_post, scalars)

    outputs = out_row.reshape(n, C2)                          # (N, 512)
    att_outputs = att_outputs.reshape(n, 1, 1, 2)             # (N, 1, 1, 2)
    att_map = att_map.reshape(n, 1, H, W)                     # (N, 1, 14, 14)
    return outputs, att_outputs, att_map


def reference_forward(feat_nchw, p):
    """Pure-JAX f32 reference of the same (unfolded) computation, for verification."""
    n = feat_nchw.shape[0]
    h = feat_nchw.reshape(n, C, HW)                           # (N, C, HW)
    g, b, m, v = p["bn256"]
    y = (h - m[:, None]) * (g * jax.lax.rsqrt(v + EPS))[:, None] + b[:, None]
    sc = p["scalars"][0]
    e = jnp.einsum("ncp,co->nop", y, p["w_ext"]) + sc[0]      # (N, 1, HW)
    a = jnp.maximum(e, 0.0) * sc[1] + sc[2]
    a = (a - sc[5]) * (sc[3] * jax.lax.rsqrt(sc[6] + EPS)) + sc[4]
    att = jax.nn.sigmoid(a)                                   # (N, 1, HW)
    hf = att * h + h                                          # (N, C, HW)
    pr = jnp.einsum("ncp,cd->ndp", hf, p["w_post"])           # (N, C2, HW)
    pooled = pr.mean(axis=2)                                  # (N, C2)
    g1, b1, m1, v1 = p["bn512"]
    outputs = (pooled - m1) * (g1 * jax.lax.rsqrt(v1 + EPS)) + b1
    s = e.mean(axis=(1, 2))                                   # (N,)
    logits = s[:, None] * p["w_cls"][0][None, :] + p["w_cls"][1][None, :]
    att_out = jax.nn.softmax(logits, axis=-1).reshape(n, 1, 1, 2)
    att_map = att.reshape(n, 1, H, W)
    return outputs, att_out, att_map


def make_params(key):
    ks = jax.random.split(key, 12)
    p = {}
    p["bn256"] = jnp.stack([
        1.0 + 0.1 * jax.random.normal(ks[0], (C,)),                       # gamma
        0.1 * jax.random.normal(ks[1], (C,)),                             # beta
        0.1 * jax.random.normal(ks[2], (C,)),                             # running_mean
        jax.random.uniform(ks[3], (C,), minval=0.5, maxval=1.5),          # running_var
    ]).astype(jnp.float32)
    p["w_ext"] = (0.05 * jax.random.normal(ks[4], (C, 1))).astype(jnp.float32)
    p["w_post"] = (0.02 * jax.random.normal(ks[5], (C, C2))).astype(jnp.float32)
    p["bn512"] = jnp.stack([
        1.0 + 0.1 * jax.random.normal(ks[6], (C2,)),
        0.1 * jax.random.normal(ks[7], (C2,)),
        0.1 * jax.random.normal(ks[8], (C2,)),
        jax.random.uniform(ks[9], (C2,), minval=0.5, maxval=1.5),
    ]).astype(jnp.float32)
    p["w_cls"] = jnp.stack([
        0.5 * jax.random.normal(ks[10], (2,)),                            # Linear(1,2).weight
        0.1 * jax.random.normal(ks[11], (2,)),                            # Linear(1,2).bias
    ]).astype(jnp.float32)
    # [b_ext, w_att, b_att, bn1_gamma, bn1_beta, bn1_mean, bn1_var, pad]
    p["scalars"] = jnp.array([[0.05, 0.8, 0.1, 1.2, -0.05, 0.02, 0.9, 0.0]],
                             dtype=jnp.float32)
    return p


if __name__ == "__main__":
    key = jax.random.PRNGKey(0)
    k_feat, k_par = jax.random.split(key)
    # TODO(synk): resnet_pre (external pretrained resnet18 head) is not part of this
    # module; its 256-channel 14x14 output features are used directly as the input.
    feat = jax.random.normal(k_feat, (N, C, H, W), dtype=jnp.float32)    # torch NCHW
    params = make_params(k_par)

    fwd = jax.jit(attention_branch_forward)
    outs = fwd(feat, params)
    outs = jax.block_until_ready(outs)

    refs = reference_forward(feat, params)
    for o, r in zip(outs, refs):
        np.testing.assert_allclose(np.asarray(o), np.asarray(r), rtol=1e-2, atol=1e-2)

    assert outs[0].shape == (N, C2)
    assert outs[1].shape == (N, 1, 1, 2)
    assert outs[2].shape == (N, 1, H, W)
    print("KERNEL_OK")
</pallas_src>

<mosaic_0001>
module attributes {stable_mosaic.version = 11 : i64} {
  func.func @attention_branch_kernel(%arg0: i32, %arg1: memref<2x256x196xbf16, #tpu.memory_space<vmem>>, %arg2: memref<1x256xbf16, #tpu.memory_space<vmem>>, %arg3: memref<256x512xbf16, #tpu.memory_space<vmem>>, %arg4: memref<1x512xf32, #tpu.memory_space<vmem>>, %arg5: memref<8xf32, #tpu.memory_space<smem>>, %arg6: memref<2x1x512xf32, #tpu.memory_space<vmem>>, %arg7: memref<2x1x2xf32, #tpu.memory_space<vmem>>, %arg8: memref<2x1x196xf32, #tpu.memory_space<vmem>>) attributes {dimension_semantics = [#tpu.dimension_semantics<parallel>], iteration_bounds = array<i64: 1>, scalar_prefetch = 0 : i64, scratch_operands = 0 : i64, tpu.core_type = #tpu.core_type<tc>, window_params = [{transform_indices = @transform_0, window_bounds = array<i64: 2, 256, 196>}, {pipeline_mode = #tpu.pipeline_mode<synchronous>, transform_indices = @transform_1, window_bounds = array<i64: 1, 256>}, {pipeline_mode = #tpu.pipeline_mode<synchronous>, transform_indices = @transform_2, window_bounds = array<i64: 256, 512>}, {pipeline_mode = #tpu.pipeline_mode<synchronous>, transform_indices = @transform_3, window_bounds = array<i64: 1, 512>}, {transform_indices = @transform_4, window_bounds = array<i64: 8>}, {transform_indices = @transform_5, window_bounds = array<i64: 2, 1, 512>}, {transform_indices = @transform_6, window_bounds = array<i64: 2, 1, 2>}, {transform_indices = @transform_7, window_bounds = array<i64: 2, 1, 196>}]} {
    %c0 = arith.constant 0 : index
    %0 = memref.load %arg5[%c0] : memref<8xf32, #tpu.memory_space<smem>>
    %c1 = arith.constant 1 : index
    %1 = memref.load %arg5[%c1] : memref<8xf32, #tpu.memory_space<smem>>
    %c2 = arith.constant 2 : index
    %2 = memref.load %arg5[%c2] : memref<8xf32, #tpu.memory_space<smem>>
    %3 = tpu.iota {dimensions = array<i32: 1>} : vector<1x2xi32>
    %c0_i32 = arith.constant 0 : i32
    %4 = vector.broadcast %c0_i32 : i32 to vector<1x2xi32>
    %5 = arith.cmpi eq, %3, %4 : vector<1x2xi32>
    %c3 = arith.constant 3 : index
    %6 = memref.load %arg5[%c3] : memref<8xf32, #tpu.memory_space<smem>>
    %c4 = arith.constant 4 : index
    %7 = memref.load %arg5[%c4] : memref<8xf32, #tpu.memory_space<smem>>
    %8 = vector.broadcast %6 : f32 to vector<1x2xf32>
    %9 = vector.broadcast %7 : f32 to vector<1x2xf32>
    %10 = arith.select %5, %8, %9 : vector<1x2xi1>, vector<1x2xf32>
    %c0_i32_0 = arith.constant 0 : i32
    %11 = vector.broadcast %c0_i32_0 : i32 to vector<1x2xi32>
    %12 = arith.cmpi eq, %3, %11 : vector<1x2xi32>
    %c5 = arith.constant 5 : index
    %13 = memref.load %arg5[%c5] : memref<8xf32, #tpu.memory_space<smem>>
    %c6 = arith.constant 6 : index
    %14 = memref.load %arg5[%c6] : memref<8xf32, #tpu.memory_space<smem>>
    %15 = vector.broadcast %13 : f32 to vector<1x2xf32>
    %16 = vector.broadcast %14 : f32 to vector<1x2xf32>
    %17 = arith.select %12, %15, %16 : vector<1x2xi1>, vector<1x2xf32>
    %c0_1 = arith.constant 0 : index
    %c0_2 = arith.constant 0 : index
    %c0_3 = arith.constant 0 : index
    %18 = vector.load %arg1[%c0_1, %c0_2, %c0_3] : memref<2x256x196xbf16, #tpu.memory_space<vmem>>, vector<1x256x196xbf16>
    %19 = vector.shape_cast %18 : vector<1x256x196xbf16> to vector<256x196xbf16>
    %c0_4 = arith.constant 0 : index
    %c0_5 = arith.constant 0 : index
    %20 = vector.load %arg2[%c0_4, %c0_5] : memref<1x256xbf16, #tpu.memory_space<vmem>>, vector<1x256xbf16>
    %cst = arith.constant dense<0.000000e+00> : vector<1x196xf32>
    %21 = tpu.matmul %20, %19, %cst {dimension_numbers = #tpu.dot_dimension_numbers<[1], [0], [0], [1], [0, 0, 1, 1], [], []>} : vector<1x256xbf16>, vector<256x196xbf16>, vector<1x196xf32> -> vector<1x196xf32>
    %22 = vector.broadcast %0 : f32 to vector<1x196xf32>
    %23 = arith.addf %21, %22 : vector<1x196xf32>
    %cst_6 = arith.constant 0.000000e+00 : f32
    %24 = vector.broadcast %cst_6 : f32 to vector<1x196xf32>
    %25 = arith.maximumf %23, %24 : vector<1x196xf32>
    %26 = vector.broadcast %1 : f32 to vector<1x196xf32>
    %27 = arith.mulf %25, %26 : vector<1x196xf32>
    %28 = vector.broadcast %2 : f32 to vector<1x196xf32>
    %29 = arith.addf %27, %28 : vector<1x196xf32>
    %30 = arith.negf %29 : vector<1x196xf32>
    %31 = math.exp %30 : vector<1x196xf32>
    %cst_7 = arith.constant 1.000000e+00 : f32
    %32 = vector.broadcast %cst_7 : f32 to vector<1x196xf32>
    %33 = arith.addf %32, %31 : vector<1x196xf32>
    %34 = arith.divf %32, %33 : vector<1x196xf32>
    %c0_8 = arith.constant 0 : index
    %c0_9 = arith.constant 0 : index
    %c0_10 = arith.constant 0 : index
    %35 = vector.load %arg8[%c0_8, %c0_9, %c0_10] : memref<2x1x196xf32, #tpu.memory_space<vmem>>, vector<1x1x196xf32>
    %36 = vector.shape_cast %35 : vector<1x1x196xf32> to vector<1x196xf32>
    %37 = vector.shape_cast %34 : vector<1x196xf32> to vector<1x1x196xf32>
    tpu.vector_store %arg8[%c0_8, %c0_9, %c0_10], %37 {strides = array<i32>} : memref<2x1x196xf32, #tpu.memory_space<vmem>>, vector<1x1x196xf32>,
    %cst_11 = arith.constant 1.000000e+00 : f32
    %38 = vector.broadcast %cst_11 : f32 to vector<1x196xf32>
    %39 = arith.addf %34, %38 : vector<1x196xf32>
    %40 = arith.truncf %39 : vector<1x196xf32> to vector<1x196xbf16>
    %cst_12 = arith.constant dense<0.000000e+00> : vector<1x256xf32>
    %41 = tpu.matmul %40, %19, %cst_12 {dimension_numbers = #tpu.dot_dimension_numbers<[1], [1], [0], [0], [0, 0, 1, 0], [], []>} : vector<1x196xbf16>, vector<256x196xbf16>, vector<1x256xf32> -> vector<1x256xf32>
    %42 = arith.truncf %41 : vector<1x256xf32> to vector<1x256xbf16>
    %c0_13 = arith.constant 0 : index
    %c0_14 = arith.constant 0 : index
    %43 = vector.load %arg3[%c0_13, %c0_14] : memref<256x512xbf16, #tpu.memory_space<vmem>>, vector<256x512xbf16>
    %cst_15 = arith.constant dense<0.000000e+00> : vector<1x512xf32>
    %44 = tpu.matmul %42, %43, %cst_15 {dimension_numbers = #tpu.dot_dimension_numbers<[1], [0], [0], [1], [0, 0, 1, 1], [], []>} : vector<1x256xbf16>, vector<256x512xbf16>, vector<1x512xf32> -> vector<1x512xf32>
    %c0_16 = arith.constant 0 : index
    %c0_17 = arith.constant 0 : index
    %45 = vector.load %arg4[%c0_16, %c0_17] : memref<1x512xf32, #tpu.memory_space<vmem>>, vector<1x512xf32>
    %46 = arith.addf %44, %45 : vector<1x512xf32>
    %c0_18 = arith.constant 0 : index
    %c0_19 = arith.constant 0 : index
    %c0_20 = arith.constant 0 : index
    %47 = vector.load %arg6[%c0_18, %c0_19, %c0_20] : memref<2x1x512xf32, #tpu.memory_space<vmem>>, vector<1x1x512xf32>
    %48 = vector.shape_cast %47 : vector<1x1x512xf32> to vector<1x512xf32>
    %49 = vector.shape_cast %46 : vector<1x512xf32> to vector<1x1x512xf32>
    tpu.vector_store %arg6[%c0_18, %c0_19, %c0_20], %49 {strides = array<i32>} : memref<2x1x512xf32, #tpu.memory_space<vmem>>, vector<1x1x512xf32>,
    %cst_21 = arith.constant dense<0.000000e+00> : vector<1xf32>
    %50 = vector.multi_reduction <add>, %23, %cst_21 [1] : vector<1x196xf32> to vector<1xf32>
    %51 = vector.shape_cast %50 : vector<1xf32> to vector<1x1xf32>
    %cst_22 = arith.constant 1.960000e+02 : f32
    %52 = vector.broadcast %cst_22 : f32 to vector<1x1xf32>
    %53 = arith.divf %51, %52 : vector<1x1xf32>
    %54 = vector.broadcast %53 : vector<1x1xf32> to vector<1x2xf32>
    %55 = arith.mulf %54, %10 : vector<1x2xf32>
    %56 = arith.addf %55, %17 : vector<1x2xf32>
    %cst_23 = arith.constant dense<0xFF800000> : vector<1xf32>
    %57 = vector.multi_reduction <maximumf>, %56, %cst_23 [1] : vector<1x2xf32> to vector<1xf32>
    %58 = vector.shape_cast %57 : vector<1xf32> to vector<1x1xf32>
    %59 = vector.broadcast %58 : vector<1x1xf32> to vector<1x2xf32>
    %60 = arith.subf %56, %59 : vector<1x2xf32>
    %61 = math.exp %60 : vector<1x2xf32>
    %cst_24 = arith.constant dense<0.000000e+00> : vector<1xf32>
    %62 = vector.multi_reduction <add>, %61, %cst_24 [1] : vector<1x2xf32> to vector<1xf32>
    %63 = vector.shape_cast %62 : vector<1xf32> to vector<1x1xf32>
    %64 = tpu.reciprocal %63 {approx = true} : vector<1x1xf32> -> vector<1x1xf32>
    %65 = vector.broadcast %64 : vector<1x1xf32> to vector<1x2xf32>
    %66 = arith.mulf %61, %65 : vector<1x2xf32>
    %c0_25 = arith.constant 0 : index
    %c0_26 = arith.constant 0 : index
    %c0_27 = arith.constant 0 : index
    %67 = vector.load %arg7[%c0_25, %c0_26, %c0_27] : memref<2x1x2xf32, #tpu.memory_space<vmem>>, vector<1x1x2xf32>
    %68 = vector.shape_cast %67 : vector<1x1x2xf32> to vector<1x2xf32>
    %69 = vector.shape_cast %66 : vector<1x2xf32> to vector<1x1x2xf32>
    tpu.vector_store %arg7[%c0_25, %c0_26, %c0_27], %69 {strides = array<i32>} : memref<2x1x2xf32, #tpu.memory_space<vmem>>, vector<1x1x2xf32>,
    %c1_28 = arith.constant 1 : index
    %c0_29 = arith.constant 0 : index
    %c0_30 = arith.constant 0 : index
    %70 = vector.load %arg1[%c1_28, %c0_29, %c0_30] : memref<2x256x196xbf16, #tpu.memory_space<vmem>>, vector<1x256x196xbf16>
    %71 = vector.shape_cast %70 : vector<1x256x196xbf16> to vector<256x196xbf16>
    %c0_31 = arith.constant 0 : index
    %c0_32 = arith.constant 0 : index
    %72 = vector.load %arg2[%c0_31, %c0_32] : memref<1x256xbf16, #tpu.memory_space<vmem>>, vector<1x256xbf16>
    %cst_33 = arith.constant dense<0.000000e+00> : vector<1x196xf32>
    %73 = tpu.matmul %72, %71, %cst_33 {dimension_numbers = #tpu.dot_dimension_numbers<[1], [0], [0], [1], [0, 0, 1, 1], [], []>} : vector<1x256xbf16>, vector<256x196xbf16>, vector<1x196xf32> -> vector<1x196xf32>
    %74 = vector.broadcast %0 : f32 to vector<1x196xf32>
    %75 = arith.addf %73, %74 : vector<1x196xf32>
    %cst_34 = arith.constant 0.000000e+00 : f32
    %76 = vector.broadcast %cst_34 : f32 to vector<1x196xf32>
    %77 = arith.maximumf %75, %76 : vector<1x196xf32>
    %78 = vector.broadcast %1 : f32 to vector<1x196xf32>
    %79 = arith.mulf %77, %78 : vector<1x196xf32>
    %80 = vector.broadcast %2 : f32 to vector<1x196xf32>
    %81 = arith.addf %79, %80 : vector<1x196xf32>
    %82 = arith.negf %81 : vector<1x196xf32>
    %83 = math.exp %82 : vector<1x196xf32>
    %cst_35 = arith.constant 1.000000e+00 : f32
    %84 = vector.broadcast %cst_35 : f32 to vector<1x196xf32>
    %85 = arith.addf %84, %83 : vector<1x196xf32>
    %86 = arith.divf %84, %85 : vector<1x196xf32>
    %c1_36 = arith.constant 1 : index
    %c0_37 = arith.constant 0 : index
    %c0_38 = arith.constant 0 : index
    %87 = vector.load %arg8[%c1_36, %c0_37, %c0_38] : memref<2x1x196xf32, #tpu.memory_space<vmem>>, vector<1x1x196xf32>
    %88 = vector.shape_cast %87 : vector<1x1x196xf32> to vector<1x196xf32>
    %89 = vector.shape_cast %86 : vector<1x196xf32> to vector<1x1x196xf32>
    tpu.vector_store %arg8[%c1_36, %c0_37, %c0_38], %89 {strides = array<i32>} : memref<2x1x196xf32, #tpu.memory_space<vmem>>, vector<1x1x196xf32>,
    %cst_39 = arith.constant 1.000000e+00 : f32
    %90 = vector.broadcast %cst_39 : f32 to vector<1x196xf32>
    %91 = arith.addf %86, %90 : vector<1x196xf32>
    %92 = arith.truncf %91 : vector<1x196xf32> to vector<1x196xbf16>
    %cst_40 = arith.constant dense<0.000000e+00> : vector<1x256xf32>
    %93 = tpu.matmul %92, %71, %cst_40 {dimension_numbers = #tpu.dot_dimension_numbers<[1], [1], [0], [0], [0, 0, 1, 0], [], []>} : vector<1x196xbf16>, vector<256x196xbf16>, vector<1x256xf32> -> vector<1x256xf32>
    %94 = arith.truncf %93 : vector<1x256xf32> to vector<1x256xbf16>
    %c0_41 = arith.constant 0 : index
    %c0_42 = arith.constant 0 : index
    %95 = vector.load %arg3[%c0_41, %c0_42] : memref<256x512xbf16, #tpu.memory_space<vmem>>, vector<256x512xbf16>
    %cst_43 = arith.constant dense<0.000000e+00> : vector<1x512xf32>
    %96 = tpu.matmul %94, %95, %cst_43 {dimension_numbers = #tpu.dot_dimension_numbers<[1], [0], [0], [1], [0, 0, 1, 1], [], []>} : vector<1x256xbf16>, vector<256x512xbf16>, vector<1x512xf32> -> vector<1x512xf32>
    %c0_44 = arith.constant 0 : index
    %c0_45 = arith.constant 0 : index
    %97 = vector.load %arg4[%c0_44, %c0_45] : memref<1x512xf32, #tpu.memory_space<vmem>>, vector<1x512xf32>
    %98 = arith.addf %96, %97 : vector<1x512xf32>
    %c1_46 = arith.constant 1 : index
    %c0_47 = arith.constant 0 : index
    %c0_48 = arith.constant 0 : index
    %99 = vector.load %arg6[%c1_46, %c0_47, %c0_48] : memref<2x1x512xf32, #tpu.memory_space<vmem>>, vector<1x1x512xf32>
    %100 = vector.shape_cast %99 : vector<1x1x512xf32> to vector<1x512xf32>
    %101 = vector.shape_cast %98 : vector<1x512xf32> to vector<1x1x512xf32>
    tpu.vector_store %arg6[%c1_46, %c0_47, %c0_48], %101 {strides = array<i32>} : memref<2x1x512xf32, #tpu.memory_space<vmem>>, vector<1x1x512xf32>,
    %cst_49 = arith.constant dense<0.000000e+00> : vector<1xf32>
    %102 = vector.multi_reduction <add>, %75, %cst_49 [1] : vector<1x196xf32> to vector<1xf32>
    %103 = vector.shape_cast %102 : vector<1xf32> to vector<1x1xf32>
    %cst_50 = arith.constant 1.960000e+02 : f32
    %104 = vector.broadcast %cst_50 : f32 to vector<1x1xf32>
    %105 = arith.divf %103, %104 : vector<1x1xf32>
    %106 = vector.broadcast %105 : vector<1x1xf32> to vector<1x2xf32>
    %107 = arith.mulf %106, %10 : vector<1x2xf32>
    %108 = arith.addf %107, %17 : vector<1x2xf32>
    %cst_51 = arith.constant dense<0xFF800000> : vector<1xf32>
    %109 = vector.multi_reduction <maximumf>, %108, %cst_51 [1] : vector<1x2xf32> to vector<1xf32>
    %110 = vector.shape_cast %109 : vector<1xf32> to vector<1x1xf32>
    %111 = vector.broadcast %110 : vector<1x1xf32> to vector<1x2xf32>
    %112 = arith.subf %108, %111 : vector<1x2xf32>
    %113 = math.exp %112 : vector<1x2xf32>
    %cst_52 = arith.constant dense<0.000000e+00> : vector<1xf32>
    %114 = vector.multi_reduction <add>, %113, %cst_52 [1] : vector<1x2xf32> to vector<1xf32>
    %115 = vector.shape_cast %114 : vector<1xf32> to vector<1x1xf32>
    %116 = tpu.reciprocal %115 {approx = true} : vector<1x1xf32> -> vector<1x1xf32>
    %117 = vector.broadcast %116 : vector<1x1xf32> to vector<1x2xf32>
    %118 = arith.mulf %113, %117 : vector<1x2xf32>
    %c1_53 = arith.constant 1 : index
    %c0_54 = arith.constant 0 : index
    %c0_55 = arith.constant 0 : index
    %119 = vector.load %arg7[%c1_53, %c0_54, %c0_55] : memref<2x1x2xf32, #tpu.memory_space<vmem>>, vector<1x1x2xf32>
    %120 = vector.shape_cast %119 : vector<1x1x2xf32> to vector<1x2xf32>
    %121 = vector.shape_cast %118 : vector<1x2xf32> to vector<1x1x2xf32>
    tpu.vector_store %arg7[%c1_53, %c0_54, %c0_55], %121 {strides = array<i32>} : memref<2x1x2xf32, #tpu.memory_space<vmem>>, vector<1x1x2xf32>,
    return
  }
  func.func @transform_0(%arg0: i32) -> (i32, i32, i32) {
    %c0_i32 = arith.constant 0 : i32
    %c0_i32_0 = arith.constant 0 : i32
    %c0_i32_1 = arith.constant 0 : i32
    return %arg0, %c0_i32, %c0_i32_0 : i32, i32, i32
  }
  func.func @transform_1(%arg0: i32) -> (i32, i32) {
    %c0_i32 = arith.constant 0 : i32
    %c0_i32_0 = arith.constant 0 : i32
    %c0_i32_1 = arith.constant 0 : i32
    return %c0_i32, %c0_i32_0 : i32, i32
  }
  func.func @transform_2(%arg0: i32) -> (i32, i32) {
    %c0_i32 = arith.constant 0 : i32
    %c0_i32_0 = arith.constant 0 : i32
    %c0_i32_1 = arith.constant 0 : i32
    return %c0_i32, %c0_i32_0 : i32, i32
  }
  func.func @transform_3(%arg0: i32) -> (i32, i32) {
    %c0_i32 = arith.constant 0 : i32
    %c0_i32_0 = arith.constant 0 : i32
    %c0_i32_1 = arith.constant 0 : i32
    return %c0_i32, %c0_i32_0 : i32, i32
  }
  func.func @transform_4(%arg0: i32) -> i32 {
    %c0_i32 = arith.constant 0 : i32
    %c0_i32_0 = arith.constant 0 : i32
    return %c0_i32 : i32
  }
  func.func @transform_5(%arg0: i32) -> (i32, i32, i32) {
    %c0_i32 = arith.constant 0 : i32
    %c0_i32_0 = arith.constant 0 : i32
    %c0_i32_1 = arith.constant 0 : i32
    return %arg0, %c0_i32, %c0_i32_0 : i32, i32, i32
  }
  func.func @transform_6(%arg0: i32) -> (i32, i32, i32) {
    %c0_i32 = arith.constant 0 : i32
    %c0_i32_0 = arith.constant 0 : i32
    %c0_i32_1 = arith.constant 0 : i32
    return %arg0, %c0_i32, %c0_i32_0 : i32, i32, i32
  }
  func.func @transform_7(%arg0: i32) -> (i32, i32, i32) {
    %c0_i32 = arith.constant 0 : i32
    %c0_i32_0 = arith.constant 0 : i32
    %c0_i32_1 = arith.constant 0 : i32
    return %arg0, %c0_i32, %c0_i32_0 : i32, i32, i32
  }
}

</mosaic_0001>

<bundles_post_ra>
// kernel: attention_branch_forward.1
= control target key start
LH: loop header
LB: loop body
LE: loop exit
PB: predicated region body
PF: predicated region fallthrough
CT: control target
= control target key end

     0   :  { %13 = vsyncpa [#allocation4], 0  ;;  %s3475_s0 = inlined_call_operand.vmem [shape: bf16[2,256,196], index: 0, kind: input, shape index: {}]   ;;  %s3476_s1 = inlined_call_operand.vmem [shape: bf16[1,256], index: 1, kind: input, shape index: {}]   ;;  %s3477_s2 = inlined_call_operand.vmem [shape: bf16[256,512], index: 2, kind: input, shape index: {}]   ;;  %s3478_s3 = inlined_call_operand.vmem [shape: f32[1,512], index: 3, kind: input, shape index: {}]   ;;  %s3479_s4 = inlined_call_operand.vmem [shape: f32[8], index: 4, kind: input, shape index: {}]   ;;  %s3480_s5 = inlined_call_operand.vmem [shape: f32[2,1,512], index: 5, kind: output, shape index: {0}]   ;;  %s3481_s6 = inlined_call_operand.hbm [shape: f32[2,1,2], index: 6, kind: output, shape index: {1}]   ;;  %s3482_s7 = inlined_call_operand.vmem [shape: f32[2,1,196], index: 7, kind: output, shape index: {2}]  }
   0x1   :  { %14 = vsyncpa [#allocation3], 0  ;;  %s29_s26 = sshll.u32 %s3479_s4, 4  ;;  %s30_s26 = int_to_ptr.vmem [resolvable:$true] %s29_s26 }
   0x2   :  { %s2453_s27 = scalar_lea.vmem %s30_s26, 16  ;;  %p2458_p1 = scmp.lt.s32.totalorder %s30_s26, %s30_s26 }
   0x3   :  { %p2454_p0 = scmp.ne.s32.totalorder %s30_s26, %s2453_s27  ;;  %p2459_p2 = scmp.lt.s32.totalorder %s2453_s27, %s2453_s27 }
   0x5   :  { %p2460_p3 = por %p2459_p2, %p2458_p1 }
   0x7   :  { %p2461_p4 = pnand %p2460_p3, %p2454_p0 }
   0x9   :  { %2464 = shalt.err (!%p2461_p4)
}
   0xa   :  { %s2491_s28 = smov [#allocation2]  }
   0xb   :  { %32 = dma.vmem_to_smem %s30_s26, 16, %s2491_s28, [#allocation4]  }
   0xc   :  { %2487 = dma.done.wait [#allocation4], 16  }
   0xd   :  { %2488 = vsyncadd [#allocation4], 4294967280 }
   0xe   :  { %36 = sfence }
   0xf   :  { %v2237_v0 = vld [vmem:[%s3475_s0 + $0x4] ss:$8 sps:$4 sm:$0xff]   ;;  %v2239_v1 = vld [vmem:[%s3475_s0] ss:$8 sps:$4 sm:$0xff]   ;;  %vm360_vm0 = vcmask 556032   ;;  %v3483_v9 = vlaneseq  ;;  %s37_s23 = sld [smem:[#allocation2]] }
  0x10   :  { %272 = vmatprep.subr.bf16.mxu0 %v2237_v0  ;;  %v2240_v2 = vld [vmem:[%s3475_s0 + $0x14] ss:$8 sps:$4 sm:$0xff]   ;;  %2001 = vmatprep.subr.msk.bf16.mxu1 %vm360_vm0, %v2237_v0  ;;  %v2242_v3 = vld [vmem:[%s3475_s0 + $0x10] ss:$8 sps:$4 sm:$0xff]   ;;  %v2243_v4 = vld [vmem:[%s3475_s0 + $0x24] ss:$8 sps:$4 sm:$0xff]  }
  0x11   :  { %273 = vmatpush1.bf16.msra.mxu0 %v2239_v1  ;;  %413 = vmatpush1.bf16.xpose.msra.mxu1 %v2239_v1  ;;  %v2245_v5 = vld [vmem:[%s3475_s0 + $0x20] ss:$8 sps:$4 sm:$0xff]   ;;  %v2246_v6 = vld [vmem:[%s3475_s0 + $0x34] ss:$8 sps:$4 sm:$0xff]   ;;  %v2248_v7 = vld [vmem:[%s3475_s0 + $0x30] ss:$8 sps:$4 sm:$0xff]  }
  0x12   :  { %274 = vmatprep.subr.bf16.mxu0 %v2240_v2  ;;  %2002 = vmatprep.subr.msk.bf16.mxu1 %vm360_vm0, %v2240_v2  ;;  %v2249_v8 = vld [vmem:[%s3475_s0 + $0x44] ss:$8 sps:$4 sm:$0xff]   ;;  %v2492_v10 = vmov 1966171168   ;;  %v2251_v12 = vld [vmem:[%s3475_s0 + $0x40] ss:$8 sps:$4 sm:$0xff]  }
  0x13   :  { %v97_v11 = vunpack.c.l.s4 %v2492_v10  ;;  %v2252_v13 = vld [vmem:[%s3475_s0 + $0x54] ss:$8 sps:$4 sm:$0xff]   ;;  %v2576_v15 = vshrl.u32 %v3483_v9, 7  ;;  %v2254_v16 = vld [vmem:[%s3475_s0 + $0x50] ss:$8 sps:$4 sm:$0xff]   ;;  %s1960_s24 = sld [smem:[#allocation2 + $0x1]] }
  0x14   :  { %v2255_v17 = vld [vmem:[%s3475_s0 + $0x64] ss:$8 sps:$4 sm:$0xff]   ;;  %v2257_v19 = vld [vmem:[%s3475_s0 + $0x60] ss:$8 sps:$4 sm:$0xff]   ;;  %v2258_v21 = vld [vmem:[%s3475_s0 + $0x74] ss:$8 sps:$4 sm:$0xff]  }
  0x15   :  { %275 = vmatpush1.bf16.msra.mxu0 %v2242_v3  ;;  %v98_v14 = vunpack.c.0.s8 %v97_v11  ;;  %3507 = vst [vmem:[#allocation8_spill] sm:$0xff] %v2576_v15  ;;  %v1966_v20 = vld.sshfl [vmem:[%s3476_s1] sm:$0x11 pattern:$0x75316420]  ;;  %s1961_s25 = sld [smem:[#allocation2 + $0x2]]  ;;  %v2674_v43 = vstv %s37_s23 }
  0x16   :  { %276 = vmatprep.subr.bf16.mxu0 %v2243_v4  ;;  %v95_v22 = vcombine.high %v1966_v20, %v1966_v20  ;;  %v2260_v24 = vld [vmem:[%s3475_s0 + $0x70] ss:$8 sps:$4 sm:$0xff]   ;;  %v2261_v25 = vld [vmem:[%s3475_s0 + $0x84] ss:$8 sps:$4 sm:$0xff]   ;;  %v2263_v26 = vld [vmem:[%s3475_s0 + $0x80] ss:$8 sps:$4 sm:$0xff]  }
  0x17   :  { %v2585_v18 = vsub.s32 %v98_v14, %v2576_v15  ;;  %v2264_v27 = vld [vmem:[%s3475_s0 + $0x94] ss:$8 sps:$4 sm:$0xff]   ;;  %v2266_v28 = vld [vmem:[%s3475_s0 + $0x90] ss:$8 sps:$4 sm:$0xff]   ;;  %v2267_v29 = vld [vmem:[%s3475_s0 + $0xa4] ss:$8 sps:$4 sm:$0xff]  }
  0x18   :  { %v2269_v30 = vld [vmem:[%s3475_s0 + $0xa0] ss:$8 sps:$4 sm:$0xff]   ;;  %v2270_v31 = vld [vmem:[%s3475_s0 + $0xb4] ss:$8 sps:$4 sm:$0xff]   ;;  %v2272_v32 = vld [vmem:[%s3475_s0 + $0xb0] ss:$8 sps:$4 sm:$0xff]  }
  0x19   :  { %277 = vmatpush1.bf16.msra.mxu0 %v2245_v5  ;;  %415 = vmatpush1.bf16.xpose.msra.mxu1 %v2242_v3  ;;  %v2598_v23 = vrot.slane %v95_v22, %v2585_v18  ;;  %v2273_v33 = vld [vmem:[%s3475_s0 + $0xc4] ss:$8 sps:$4 sm:$0xff]   ;;  %v2275_v34 = vld [vmem:[%s3475_s0 + $0xc0] ss:$8 sps:$4 sm:$0xff]   ;;  %v2276_v35 = vld [vmem:[%s3475_s0 + $0xd4] ss:$8 sps:$4 sm:$0xff]   ;;  %v2658_v41 = vrot.slane %v1966_v20, %v2585_v18  ;;  %v2677_v47 = vstv %s1960_s24 }
  0x1a   :  { %278 = vmatprep.subr.bf16.mxu0 %v2246_v6  ;;  %2003 = vmatprep.subr.msk.bf16.mxu1 %vm360_vm0, %v2243_v4  ;;  %v2278_v36 = vld [vmem:[%s3475_s0 + $0xd0] ss:$8 sps:$4 sm:$0xff]   ;;  %v2279_v37 = vld [vmem:[%s3475_s0 + $0xe4] ss:$8 sps:$4 sm:$0xff]   ;;  %v2281_v38 = vld [vmem:[%s3475_s0 + $0xe0] ss:$8 sps:$4 sm:$0xff]  }
  0x1b   :  { %304 = vmatprep.mubr.bf16.mxu0 %v2598_v23  ;;  %v2282_v39 = vld [vmem:[%s3475_s0 + $0xf4] ss:$8 sps:$4 sm:$0xff]   ;;  %v2284_v40 = vld [vmem:[%s3475_s0 + $0xf0] ss:$8 sps:$4 sm:$0xff]   ;;  %v2671_v42 = vld [vmem:[%s3475_s0 + $0x104] ss:$8 sps:$4 sm:$0xff]   ;;  %v2681_v53 = vstv %s1961_s25 }
  0x1c   :  { %vm975_vm1 = vcmask 1040384   ;;  %vm977_vm2 = vcmask 548864   ;;  %v2691_v3 = vld [vmem:[%s3477_s2] ss:$16 sps:$4 sm:$0xff]   ;;  %v2696_v4 = vld [vmem:[%s3477_s2 + $0x4] ss:$16 sps:$4 sm:$0xff]  }
  0x1d   :  { %279 = vmatpush1.bf16.msra.mxu0 %v2248_v7  ;;  %v2732_v20 = vld [vmem:[%s3475_s0 + $0x100] ss:$8 sps:$4 sm:$0xff]   ;;  %vm2735_vm3 = vcmp.lt.s32.totalorder %v3483_v9, 196  ;;  %v3033_v9 = vld [vmem:[%s3475_s0 + $0x1d4] ss:$8 sps:$4 sm:$0xff]   ;;  %s1962_s30 = sld [smem:[#allocation2 + $0x3]] }
  0x1e   :  { %280 = vmatprep.subr.bf16.mxu0 %v2249_v8  ;;  %3513 = vst [vmem:[#allocation12_spill] sm:$0xff] %v3033_v9  ;;  %v3040_v15 = vld [vmem:[%s3475_s0 + $0x1d0] ss:$8 sps:$4 sm:$0xff]   ;;  %s1963_s8 = sld [smem:[#allocation2 + $0x4]]  ;;  %s1964_s9 = sld [smem:[#allocation2 + $0x5]]  ;;  %vm986_vm5 = vcmask 8192  }
  0x1f   :  { %s1965_s4 = sld [smem:[#allocation2 + $0x6]]  ;;  %s2493_s23 = smov [#allocation5]  }
  0x20   :  { %s1942_s24 = sshll.u32 %s2493_s23, 4  ;;  %s1943_s24 = int_to_ptr.vmem [resolvable:$true] %s1942_s24 }
  0x21   :  { %281 = vmatpush1.bf16.msra.mxu0 %v2251_v12  ;;  %417 = vmatpush1.bf16.xpose.msra.mxu1 %v2245_v5  ;;  %v2701_v5 = vld [vmem:[%s3477_s2 + $0x24] ss:$16 sps:$4 sm:$0xff]   ;;  %p2470_p6 = scmp.lt.s32.totalorder %s1943_s24, %s1943_s24 }
  0x22   :  { %282 = vmatprep.subr.bf16.mxu0 %v2252_v13  ;;  %2004 = vmatprep.subr.msk.bf16.mxu1 %vm360_vm0, %v2246_v6  ;;  %v2708_v6 = vld [vmem:[%s3477_s2 + $0x20] ss:$16 sps:$4 sm:$0xff]  }
  0x25   :  { %283 = vmatpush1.bf16.msra.mxu0 %v2254_v16 }
  0x26   :  { %284 = vmatprep.subr.bf16.mxu0 %v2255_v17 }
  0x29   :  { %285 = vmatpush1.bf16.msra.mxu0 %v2257_v19  ;;  %419 = vmatpush1.bf16.xpose.msra.mxu1 %v2248_v7  ;;  %v2714_v7 = vld [vmem:[%s3477_s2 + $0x44] ss:$16 sps:$4 sm:$0xff]  }
  0x2a   :  { %286 = vmatprep.subr.bf16.mxu0 %v2258_v21  ;;  %2005 = vmatprep.subr.msk.bf16.mxu1 %vm360_vm0, %v2249_v8 }
  0x2d   :  { %287 = vmatpush1.bf16.msra.mxu0 %v2260_v24 }
  0x2e   :  { %288 = vmatprep.subr.bf16.mxu0 %v2261_v25 }
  0x31   :  { %289 = vmatpush1.bf16.msra.mxu0 %v2263_v26  ;;  %421 = vmatpush1.bf16.xpose.msra.mxu1 %v2251_v12  ;;  %v2720_v12 = vld [vmem:[%s3477_s2 + $0x40] ss:$16 sps:$4 sm:$0xff]  }
  0x32   :  { %290 = vmatprep.subr.bf16.mxu0 %v2264_v27  ;;  %2006 = vmatprep.subr.msk.bf16.mxu1 %vm360_vm0, %v2252_v13 }
  0x35   :  { %291 = vmatpush1.bf16.msra.mxu0 %v2266_v28 }
  0x36   :  { %292 = vmatprep.subr.bf16.mxu0 %v2267_v29 }
  0x39   :  { %293 = vmatpush1.bf16.msra.mxu0 %v2269_v30  ;;  %423 = vmatpush1.bf16.xpose.msra.mxu1 %v2254_v16  ;;  %v2726_v16 = vld [vmem:[%s3477_s2 + $0x64] ss:$16 sps:$4 sm:$0xff]  }
  0x3a   :  { %294 = vmatprep.subr.bf16.mxu0 %v2270_v31  ;;  %2007 = vmatprep.subr.msk.bf16.mxu1 %vm360_vm0, %v2255_v17 }
  0x3d   :  { %295 = vmatpush1.bf16.msra.mxu0 %v2272_v32 }
  0x3e   :  { %296 = vmatprep.subr.bf16.mxu0 %v2273_v33 }
  0x41   :  { %297 = vmatpush1.bf16.msra.mxu0 %v2275_v34  ;;  %425 = vmatpush1.bf16.xpose.msra.mxu1 %v2257_v19 }
  0x42   :  { %298 = vmatprep.subr.bf16.mxu0 %v2276_v35  ;;  %2008 = vmatprep.subr.msk.bf16.mxu1 %vm360_vm0, %v2258_v21 }
  0x45   :  { %299 = vmatpush1.bf16.msra.mxu0 %v2278_v36 }
  0x46   :  { %300 = vmatprep.subr.bf16.mxu0 %v2279_v37 }
  0x49   :  { %301 = vmatpush1.bf16.msra.mxu0 %v2281_v38  ;;  %427 = vmatpush1.bf16.xpose.msra.mxu1 %v2260_v24  ;;  %v2742_v24 = vld [vmem:[%s3475_s0 + $0x114] ss:$8 sps:$4 sm:$0xff]  }
  0x4a   :  { %302 = vmatprep.subr.bf16.mxu0 %v2282_v39  ;;  %2009 = vmatprep.subr.msk.bf16.mxu1 %vm360_vm0, %v2261_v25  ;;  %v2748_v25 = vld [vmem:[%s3477_s2 + $0x60] ss:$16 sps:$4 sm:$0xff]  }
  0x4d   :  { %303 = vmatpush1.bf16.msra.mxu0 %v2284_v40 }
  0x4e   :  { %861 = vmatprep.subr.bf16.mxu0 %v2696_v4 }
  0x50   :  { %305 = vmatmul.mubr.bf16.vlgmr.msra.gmra.mrb[0].mxu0 %v2658_v41 }
  0x51   :  { %429 = vmatpush1.bf16.xpose.msra.mxu1 %v2263_v26  ;;  %862 = vmatpush1.bf16.msra.mxu0 %v2691_v3 }
  0x52   :  { %2010 = vmatprep.subr.msk.bf16.mxu1 %vm360_vm0, %v2264_v27  ;;  %863 = vmatprep.subr.bf16.mxu0 %v2701_v5  ;;  %v2756_v27 = vld [vmem:[%s3477_s2 + $0x84] ss:$16 sps:$4 sm:$0xff]  }
  0x55   :  { %864 = vmatpush1.bf16.msra.mxu0 %v2708_v6 }
  0x56   :  { %865 = vmatprep.subr.bf16.mxu0 %v2714_v7 }
  0x59   :  { %431 = vmatpush1.bf16.xpose.msra.mxu1 %v2266_v28  ;;  %866 = vmatpush1.bf16.msra.mxu0 %v2720_v12  ;;  %v2767_v28 = vld [vmem:[%s3475_s0 + $0x110] ss:$8 sps:$4 sm:$0xff]  }
  0x5a   :  { %2011 = vmatprep.subr.msk.bf16.mxu1 %vm360_vm0, %v2267_v29  ;;  %867 = vmatprep.subr.bf16.mxu0 %v2726_v16  ;;  %v2774_v29 = vld [vmem:[%s3475_s0 + $0x124] ss:$8 sps:$4 sm:$0xff]  }
  0x5d   :  { %868 = vmatpush1.bf16.msra.mxu0 %v2748_v25 }
  0x5e   :  { %869 = vmatprep.subr.bf16.mxu0 %v2756_v27 }
  0x61   :  { %433 = vmatpush1.bf16.xpose.msra.mxu1 %v2269_v30  ;;  %v2780_v30 = vld [vmem:[%s3477_s2 + $0x80] ss:$16 sps:$4 sm:$0xff]  }
  0x62   :  { %2012 = vmatprep.subr.msk.bf16.mxu1 %vm360_vm0, %v2270_v31  ;;  %v2792_v31 = vld [vmem:[%s3475_s0 + $0x120] ss:$8 sps:$4 sm:$0xff]   ;;  %870 = vmatpush1.bf16.msra.mxu0 %v2780_v30 }
  0x69   :  { %435 = vmatpush1.bf16.xpose.msra.mxu1 %v2272_v32  ;;  %v2798_v32 = vld [vmem:[%s3475_s0 + $0x134] ss:$8 sps:$4 sm:$0xff]  }
  0x6a   :  { %2013 = vmatprep.subr.msk.bf16.mxu1 %vm360_vm0, %v2273_v33  ;;  %v2804_v33 = vld [vmem:[%s3477_s2 + $0xa0] ss:$16 sps:$4 sm:$0xff]  }
  0x71   :  { %437 = vmatpush1.bf16.xpose.msra.mxu1 %v2275_v34  ;;  %v2810_v34 = vld [vmem:[%s3477_s2 + $0xc4] ss:$16 sps:$4 sm:$0xff]  }
  0x72   :  { %2014 = vmatprep.subr.msk.bf16.mxu1 %vm360_vm0, %v2276_v35  ;;  %v2816_v35 = vld [vmem:[%s3475_s0 + $0x130] ss:$8 sps:$4 sm:$0xff]  }
  0x79   :  { %439 = vmatpush1.bf16.xpose.msra.mxu1 %v2278_v36  ;;  %v2822_v36 = vld [vmem:[%s3475_s0 + $0x144] ss:$8 sps:$4 sm:$0xff]  }
  0x7a   :  { %2015 = vmatprep.subr.msk.bf16.mxu1 %vm360_vm0, %v2279_v37  ;;  %v2828_v37 = vld [vmem:[%s3477_s2 + $0xc0] ss:$16 sps:$4 sm:$0xff]  }
  0x81   :  { %441 = vmatpush1.bf16.xpose.msra.mxu1 %v2281_v38  ;;  %v2834_v38 = vld [vmem:[%s3477_s2 + $0xe4] ss:$16 sps:$4 sm:$0xff]  }
  0x82   :  { %2016 = vmatprep.subr.msk.bf16.mxu1 %vm360_vm0, %v2282_v39  ;;  %v2840_v39 = vld [vmem:[%s3475_s0 + $0x140] ss:$8 sps:$4 sm:$0xff]  }
  0x89   :  { %443 = vmatpush1.bf16.xpose.msra.mxu1 %v2284_v40  ;;  %v2846_v40 = vld [vmem:[%s3475_s0 + $0x154] ss:$8 sps:$4 sm:$0xff]  }
  0x8a   :  { %1218 = vmatprep.subr.bf16.mxu1 %v2671_v42 }
 0x123   :  { %v306_v44 = vpop.f32.mrb[0].mxu0 }
 0x124   :  { %v307_v45 = vadd.f32 %v306_v44, %v2674_v43  ;;  %v308_v46 = vpop.f32.mrb[1].mxu0  ;;  %v2852_v44 = vld [vmem:[%s3477_s2 + $0xe0] ss:$16 sps:$4 sm:$0xff]  }
 0x125   :  { %v309_v48 = vadd.f32 %v308_v46, %v2674_v43  ;;  %v310_v49 = vpop.f32.mrb[2].mxu0  ;;  %v2864_v46 = vld [vmem:[%s3475_s0 + $0x150] ss:$8 sps:$4 sm:$0xff]  }
 0x126   :  { %v313_v50 = vmax.f32 %v307_v45, 0.0  ;;  %v311_v51 = vpop.f32.mrb[3].mxu0  ;;  %v976_v52 = vsel %vm975_vm1, %v307_v45, 0.0  ;;  %v2858_v45 = vld [vmem:[%s3477_s2 + $0x104] ss:$16 sps:$4 sm:$0xff]  }
 0x127   :  { %v314_v54 = vmax.f32 %v309_v48, 0.0  ;;  %v978_v55 = vsel %vm977_vm2, %v309_v48, 0.0  ;;  %v2870_v48 = vld [vmem:[%s3475_s0 + $0x164] ss:$8 sps:$4 sm:$0xff]   ;;  %v2876_v49 = vld [vmem:[%s3477_s2 + $0x100] ss:$16 sps:$4 sm:$0xff]  }
 0x128   :  { %v316_v56 = vmul.f32 %v2677_v47, %v313_v50  ;;  %v979_v57 = vadd.f32 %v978_v55, %v976_v52  ;;  %v2882_v50 = vld [vmem:[%s3477_s2 + $0x124] ss:$16 sps:$4 sm:$0xff]   ;;  %v2888_v51 = vld [vmem:[%s3475_s0 + $0x160] ss:$8 sps:$4 sm:$0xff]  }
 0x129   :  { %v317_v58 = vmul.f32 %v2677_v47, %v314_v54  ;;  %v2894_v52 = vld [vmem:[%s3475_s0 + $0x174] ss:$8 sps:$4 sm:$0xff]   ;;  %v2900_v54 = vld [vmem:[%s3477_s2 + $0x120] ss:$16 sps:$4 sm:$0xff]  }
 0x12a   :  { %v319_v59 = vadd.f32 %v2681_v53, %v316_v56  ;;  %980 = vadd.xlane.f32.xlu0 %v979_v57  ;;  %v2906_v55 = vld [vmem:[%s3477_s2 + $0x144] ss:$16 sps:$4 sm:$0xff]   ;;  %v2912_v56 = vld [vmem:[%s3475_s0 + $0x170] ss:$8 sps:$4 sm:$0xff]  }
 0x12b   :  { %v320_v60 = vadd.f32 %v2681_v53, %v317_v58  ;;  %v2918_v57 = vld [vmem:[%s3475_s0 + $0x184] ss:$8 sps:$4 sm:$0xff]   ;;  %v2924_v58 = vld [vmem:[%s3477_s2 + $0x140] ss:$16 sps:$4 sm:$0xff]  }
 0x12c   :  { %v1999_v61 = vmul.f32 -1.442695, %v319_v59  ;;  %v2930_v59 = vld [vmem:[%s3477_s2 + $0x164] ss:$16 sps:$4 sm:$0xff]  }
 0x12d   :  { %v2000_v62 = vmul.f32 -1.442695, %v320_v60  ;;  %v2936_v60 = vld [vmem:[%s3475_s0 + $0x180] ss:$8 sps:$4 sm:$0xff]  }
 0x12e   :  { %2429 = vpow2.f32 %v1999_v61  ;;  %v2942_v61 = vld [vmem:[%s3475_s0 + $0x194] ss:$8 sps:$4 sm:$0xff]  }
 0x12f   :  { %2431 = vpow2.f32 %v2000_v62  ;;  %v2948_v62 = vld [vmem:[%s3477_s2 + $0x160] ss:$16 sps:$4 sm:$0xff]  }
 0x138   :  { %v2430_v63 = vpop.eup %2429 }
 0x139   :  { %v2432_v0 = vpop.eup %2431  ;;  %v327_v1 = vadd.f32 1.0, %v2430_v63  ;;  %v2954_v63 = vld [vmem:[%s3477_s2 + $0x184] ss:$16 sps:$4 sm:$0xff]  }
 0x13a   :  { %v328_v2 = vadd.f32 1.0, %v2432_v0  ;;  %v2960_v0 = vld [vmem:[%s3475_s0 + $0x190] ss:$8 sps:$4 sm:$0xff]  }
 0x13b   :  { %2433 = vrcp.f32 %v327_v1  ;;  %v2966_v1 = vld [vmem:[%s3475_s0 + $0x1a4] ss:$8 sps:$4 sm:$0xff]  }
 0x13c   :  { %2435 = vrcp.f32 %v328_v2  ;;  %v2972_v2 = vld [vmem:[%s3477_s2 + $0x180] ss:$16 sps:$4 sm:$0xff]  }
 0x145   :  { %v2434_v8 = vpop.eup %2433 }
 0x146   :  { %v2436_v10 = vpop.eup %2435  ;;  %v356_v11 = vadd.f32 1.0, %v2434_v8 }
 0x147   :  { %v335_v13 = vcombine.low %v2434_v8, %v2436_v10  ;;  %v357_v14 = vadd.f32 1.0, %v2436_v10  ;;  %v2978_v8 = vld [vmem:[%s3477_s2 + $0x1a4] ss:$16 sps:$4 sm:$0xff]   ;;  %v2984_v10 = vld [vmem:[%s3475_s0 + $0x1a0] ss:$8 sps:$4 sm:$0xff]  }
 0x148   :  { %v358_v22 = vpack.c.bf16 %v356_v11, %v356_v11  ;;  %v2990_v11 = vld [vmem:[%s3475_s0 + $0x1b4] ss:$8 sps:$4 sm:$0xff]  }
 0x149   :  { %v342_v17 = vrot.slane %v335_v13, %v2585_v18  ;;  %v359_v19 = vpack.c.bf16 %v357_v14, %v357_v14  ;;  %v2996_v13 = vld [vmem:[%s3477_s2 + $0x1a0] ss:$16 sps:$4 sm:$0xff]   ;;  %v3002_v14 = vld [vmem:[%s3477_s2 + $0x1c4] ss:$16 sps:$4 sm:$0xff]  }
 0x14b   :  { %v349_v26 = vrot.slane %v342_v17, %v2585_v18  ;;  %2017 = vmatprep.mubr.msk.bf16.mxu1 %vm360_vm0, %v359_v19  ;;  %v3008_v17 = vld [vmem:[%s3475_s0 + $0x1b0] ss:$8 sps:$4 sm:$0xff]   ;;  %v3014_v19 = vld [vmem:[%s3475_s0 + $0x1c4] ss:$8 sps:$4 sm:$0xff]  }
 0x14c   :  { %445 = vmatmul.mubr.bf16.vlgmr.msra.gmra.mrb[0].mxu1 %v358_v22  ;;  %3510 = vst [vmem:[#allocation9_spill] sm:$0xff] %v3008_v17  ;;  %3511 = vst [vmem:[#allocation10_spill] sm:$0xff] %v3014_v19  ;;  %v3020_v22 = vld [vmem:[%s3477_s2 + $0x1c0] ss:$16 sps:$4 sm:$0xff]  }
 0x14d   :  { %355 = vst.msk [vmem:[%s3482_s7] sm:$0x3] %vm2735_vm3, %v349_v26  ;;  %1219 = vmatpush1.bf16.msra.mxu1 %v2732_v20  ;;  %1250 = vmatprep.mubr.bf16.mxu1 %v2598_v23  ;;  %v2786_v23 = vld [vmem:[%s3477_s2 + $0xa4] ss:$16 sps:$4 sm:$0xff]   ;;  %v3027_v26 = vld [vmem:[%s3475_s0 + $0x1c0] ss:$8 sps:$4 sm:$0xff]  }
 0x14e   :  { %1220 = vmatprep.subr.bf16.mxu1 %v2742_v24  ;;  %871 = vmatprep.subr.bf16.mxu0 %v2786_v23  ;;  %3512 = vst [vmem:[#allocation11_spill] sm:$0xff] %v3027_v26 }
 0x14f   :  { %872 = vmatpush1.bf16.msra.mxu0 %v2804_v33 }
 0x150   :  { %873 = vmatprep.subr.bf16.mxu0 %v2810_v34 }
 0x151   :  { %1221 = vmatpush1.bf16.msra.mxu1 %v2767_v28 }
 0x152   :  { %1222 = vmatprep.subr.bf16.mxu1 %v2774_v29 }
 0x153   :  { %874 = vmatpush1.bf16.msra.mxu0 %v2828_v37  ;;  %v3531_v21 = vld [vmem:[#allocation9_spill] sm:$0xff] }
 0x154   :  { %875 = vmatprep.subr.bf16.mxu0 %v2834_v38 }
 0x155   :  { %1223 = vmatpush1.bf16.msra.mxu1 %v2792_v31 }
 0x156   :  { %1224 = vmatprep.subr.bf16.mxu1 %v2798_v32 }
 0x157   :  { %876 = vmatpush1.bf16.msra.mxu0 %v2852_v44 }
 0x158   :  { %877 = vmatprep.subr.bf16.mxu0 %v2858_v45 }
 0x159   :  { %1225 = vmatpush1.bf16.msra.mxu1 %v2816_v35 }
 0x15a   :  { %1226 = vmatprep.subr.bf16.mxu1 %v2822_v36 }
 0x15b   :  { %878 = vmatpush1.bf16.msra.mxu0 %v2876_v49 }
 0x15c   :  { %879 = vmatprep.subr.bf16.mxu0 %v2882_v50 }
 0x15d   :  { %1227 = vmatpush1.bf16.msra.mxu1 %v2840_v39 }
 0x15e   :  { %1228 = vmatprep.subr.bf16.mxu1 %v2846_v40 }
 0x15f   :  { %880 = vmatpush1.bf16.msra.mxu0 %v2900_v54 }
 0x160   :  { %881 = vmatprep.subr.bf16.mxu0 %v2906_v55 }
 0x161   :  { %1229 = vmatpush1.bf16.msra.mxu1 %v2864_v46 }
 0x162   :  { %1230 = vmatprep.subr.bf16.mxu1 %v2870_v48 }
 0x163   :  { %882 = vmatpush1.bf16.msra.mxu0 %v2924_v58 }
 0x164   :  { %883 = vmatprep.subr.bf16.mxu0 %v2930_v59 }
 0x165   :  { %1231 = vmatpush1.bf16.msra.mxu1 %v2888_v51 }
 0x166   :  { %1232 = vmatprep.subr.bf16.mxu1 %v2894_v52 }
 0x167   :  { %884 = vmatpush1.bf16.msra.mxu0 %v2948_v62 }
 0x168   :  { %885 = vmatprep.subr.bf16.mxu0 %v2954_v63 }
 0x169   :  { %1233 = vmatpush1.bf16.msra.mxu1 %v2912_v56 }
 0x16a   :  { %1234 = vmatprep.subr.bf16.mxu1 %v2918_v57 }
 0x16b   :  { %886 = vmatpush1.bf16.msra.mxu0 %v2972_v2 }
 0x16c   :  { %887 = vmatprep.subr.bf16.mxu0 %v2978_v8 }
 0x16d   :  { %1235 = vmatpush1.bf16.msra.mxu1 %v2936_v60 }
 0x16e   :  { %1236 = vmatprep.subr.bf16.mxu1 %v2942_v61 }
 0x16f   :  { %888 = vmatpush1.bf16.msra.mxu0 %v2996_v13 }
 0x170   :  { %889 = vmatprep.subr.bf16.mxu0 %v3002_v14 }
 0x171   :  { %1237 = vmatpush1.bf16.msra.mxu1 %v2960_v0 }
 0x172   :  { %1238 = vmatprep.subr.bf16.mxu1 %v2966_v1 }
 0x173   :  { %890 = vmatpush1.bf16.msra.mxu0 %v3020_v22 }
 0x175   :  { %1239 = vmatpush1.bf16.msra.mxu1 %v2984_v10 }
 0x176   :  { %1240 = vmatprep.subr.bf16.mxu1 %v2990_v11 }
 0x179   :  { %1241 = vmatpush1.bf16.msra.mxu1 %v3008_v17  ;;  %v3052_v17 = vld [vmem:[%s3475_s0 + $0x1e0] ss:$8 sps:$4 sm:$0xff]  }
 0x17a   :  { %1242 = vmatprep.subr.bf16.mxu1 %v3014_v19  ;;  %v3046_v19 = vld [vmem:[%s3475_s0 + $0x1e4] ss:$8 sps:$4 sm:$0xff]  }
 0x17d   :  { %1243 = vmatpush1.bf16.msra.mxu1 %v3027_v26  ;;  %v3058_v26 = vld [vmem:[%s3475_s0 + $0x1f4] ss:$8 sps:$4 sm:$0xff]  }
 0x17e   :  { %1244 = vmatprep.subr.bf16.mxu1 %v3033_v9  ;;  %v3064_v9 = vld [vmem:[%s3475_s0 + $0x1f0] ss:$8 sps:$4 sm:$0xff]   ;;  %s2465_s0 = scalar_lea.vmem %s1943_s24, 32 }
 0x17f   :  { %p2466_p5 = scmp.ne.s32.totalorder %s1943_s24, %s2465_s0  ;;  %p2471_p7 = scmp.lt.s32.totalorder %s2465_s0, %s2465_s0 }
 0x181   :  { %1245 = vmatpush1.bf16.msra.mxu1 %v3040_v15  ;;  %p2472_p8 = por %p2471_p7, %p2470_p6 }
 0x182   :  { %1246 = vmatprep.subr.bf16.mxu1 %v3046_v19 }
 0x183   :  { %p2473_p9 = pnand %p2472_p8, %p2466_p5 }
 0x185   :  { %1247 = vmatpush1.bf16.msra.mxu1 %v3052_v17 }
 0x186   :  { %1248 = vmatprep.subr.bf16.mxu1 %v3058_v26 }
 0x189   :  { %1249 = vmatpush1.bf16.msra.mxu1 %v3064_v9 }
 0x18a   :  { %1801 = vmatprep.subr.bf16.mxu1 %v2696_v4  ;;  %v2383_v4 = vld [vmem:[%s3477_s2 + $0xc] ss:$16 sps:$4 sm:$0xff]  }
 0x18c   :  { %1251 = vmatmul.mubr.bf16.vlgmr.msra.gmra.mrb[4].mxu1 %v2658_v41  ;;  %v2380_v41 = vld [vmem:[%s3477_s2 + $0x1e4] ss:$16 sps:$4 sm:$0xff]  }
 0x18d   :  { %1802 = vmatpush1.bf16.msra.mxu1 %v2691_v3  ;;  %v2378_v3 = vld [vmem:[%s3477_s2 + $0x1e0] ss:$16 sps:$4 sm:$0xff]   ;;  %891 = vmatprep.subr.bf16.mxu0 %v2380_v41 }
 0x18e   :  { %1803 = vmatprep.subr.bf16.mxu1 %v2701_v5  ;;  %892 = vmatpush1.bf16.msra.mxu0 %v2378_v3  ;;  %v3514_v5 = vlaneseq }
 0x18f   :  { %902 = vmatprep.subr.bf16.mxu0 %v2383_v4 }
 0x190   :  { %vm3401_vm6 = vcmp.lt.s32.totalorder %v3514_v5, 512 }
 0x191   :  { %1804 = vmatpush1.bf16.msra.mxu1 %v2708_v6  ;;  %v41_v6 = vand.u32 127, %v3514_v5 }
 0x192   :  { %1805 = vmatprep.subr.bf16.mxu1 %v2714_v7  ;;  %v45_v7 = vstv %s1962_s30 }
 0x193   :  { %vm42_vm4 = vcmp.eq.s32.totalorder %v41_v6, 0  ;;  %v3196_v6 = vld [vmem:[%s3477_s2 + $0xc8] ss:$16 sps:$4 sm:$0xff]  }
 0x195   :  { %1806 = vmatpush1.bf16.msra.mxu1 %v2720_v12  ;;  %v46_v12 = vstv %s1963_s8 }
 0x196   :  { %1807 = vmatprep.subr.bf16.mxu1 %v2726_v16  ;;  %v50_v16 = vstv %s1964_s9 }
 0x199   :  { %1808 = vmatpush1.bf16.msra.mxu1 %v2748_v25  ;;  %v51_v25 = vstv %s1965_s4 }
 0x19a   :  { %1809 = vmatprep.subr.bf16.mxu1 %v2756_v27  ;;  %v3102_v27 = vsel %vm42_vm4, %v45_v7, %v46_v12  ;;  %v3202_v7 = vld [vmem:[%s3477_s2 + $0xec] ss:$16 sps:$4 sm:$0xff]   ;;  %v3208_v12 = vld [vmem:[%s3477_s2 + $0xe8] ss:$16 sps:$4 sm:$0xff]  }
 0x19d   :  { %1810 = vmatpush1.bf16.msra.mxu1 %v2780_v30 }
 0x19e   :  { %1811 = vmatprep.subr.bf16.mxu1 %v2786_v23 }
 0x1a1   :  { %1812 = vmatpush1.bf16.msra.mxu1 %v2804_v33  ;;  %v3104_v33 = vsel %vm42_vm4, %v50_v16, %v51_v25  ;;  %v3214_v16 = vld [vmem:[%s3477_s2 + $0x10c] ss:$16 sps:$4 sm:$0xff]   ;;  %v3220_v25 = vld [vmem:[%s3477_s2 + $0x108] ss:$16 sps:$4 sm:$0xff]  }
 0x1a2   :  { %1813 = vmatprep.subr.bf16.mxu1 %v2810_v34  ;;  %3515 = vst [vmem:[#allocation13_spill] sm:$0xff] %v3214_v16  ;;  %3516 = vst [vmem:[#allocation14_spill] sm:$0xff] %v3220_v25 }
 0x1a5   :  { %1814 = vmatpush1.bf16.msra.mxu1 %v2828_v37 }
 0x1a6   :  { %1815 = vmatprep.subr.bf16.mxu1 %v2834_v38 }
 0x1a9   :  { %1816 = vmatpush1.bf16.msra.mxu1 %v2852_v44 }
 0x1aa   :  { %1817 = vmatprep.subr.bf16.mxu1 %v2858_v45 }
 0x1ad   :  { %1818 = vmatpush1.bf16.msra.mxu1 %v2876_v49 }
 0x1ae   :  { %1819 = vmatprep.subr.bf16.mxu1 %v2882_v50 }
 0x1b1   :  { %1820 = vmatpush1.bf16.msra.mxu1 %v2900_v54  ;;  %v3122_v54 = vld [vmem:[%s3477_s2 + $0x8] ss:$16 sps:$4 sm:$0xff]  }
 0x1b2   :  { %1821 = vmatprep.subr.bf16.mxu1 %v2906_v55 }
 0x1b5   :  { %1822 = vmatpush1.bf16.msra.mxu1 %v2924_v58 }
 0x1b6   :  { %1823 = vmatprep.subr.bf16.mxu1 %v2930_v59  ;;  %v3129_v59 = vld [vmem:[%s3477_s2 + $0x2c] ss:$16 sps:$4 sm:$0xff]  }
 0x1b7   :  { %v981_v30 = vpop.xlane.xlu0 %980 }
 0x1b8   :  { %v983_v23 = vmul.f32 0.0051020407, %v981_v30  ;;  %v3226_v30 = vld [vmem:[%s3477_s2 + $0x12c] ss:$16 sps:$4 sm:$0xff]  }
 0x1b9   :  { %1824 = vmatpush1.bf16.msra.mxu1 %v2948_v62  ;;  %v3136_v62 = vld [vmem:[%s3477_s2 + $0x28] ss:$16 sps:$4 sm:$0xff]   ;;  %3517 = vst [vmem:[#allocation15_spill] sm:$0xff] %v3226_v30 }
 0x1ba   :  { %v984_v34 = vmul.f32 %v983_v23, %v3102_v27  ;;  %1825 = vmatprep.subr.bf16.mxu1 %v2954_v63  ;;  %v3142_v63 = vld [vmem:[%s3477_s2 + $0x4c] ss:$16 sps:$4 sm:$0xff]   ;;  %v3232_v23 = vld [vmem:[%s3477_s2 + $0x128] ss:$16 sps:$4 sm:$0xff]  }
 0x1bb   :  { %3518 = vst [vmem:[#allocation16_spill] sm:$0xff] %v3232_v23 }
 0x1bc   :  { %v3110_v37 = vadd.f32 %v984_v34, %v3104_v33  ;;  %v3238_v34 = vld [vmem:[%s3477_s2 + $0x14c] ss:$16 sps:$4 sm:$0xff]  }
 0x1bd   :  { %1826 = vmatpush1.bf16.msra.mxu1 %v2972_v2  ;;  %v3148_v2 = vld [vmem:[%s3477_s2 + $0x48] ss:$16 sps:$4 sm:$0xff]   ;;  %3519 = vst [vmem:[#allocation17_spill] sm:$0xff] %v3238_v34 }
 0x1be   :  { %v987_v38 = vsel %vm986_vm5, %v3110_v37, -inf  ;;  %1827 = vmatprep.subr.bf16.mxu1 %v2978_v8  ;;  %v3154_v8 = vld [vmem:[%s3477_s2 + $0x6c] ss:$16 sps:$4 sm:$0xff]  }
 0x1bf   :  { %988 = vmax.xlane.f32.xlu1 %v987_v38  ;;  %v3244_v38 = vld [vmem:[%s3477_s2 + $0x148] ss:$16 sps:$4 sm:$0xff]  }
 0x1c0   :  { %3520 = vst [vmem:[#allocation18_spill] sm:$0xff] %v3244_v38 }
 0x1c1   :  { %1828 = vmatpush1.bf16.msra.mxu1 %v2996_v13  ;;  %v3160_v13 = vld [vmem:[%s3477_s2 + $0x68] ss:$16 sps:$4 sm:$0xff]  }
 0x1c2   :  { %1829 = vmatprep.subr.bf16.mxu1 %v3002_v14  ;;  %v3166_v14 = vld [vmem:[%s3477_s2 + $0x8c] ss:$16 sps:$4 sm:$0xff]  }
 0x1c5   :  { %1830 = vmatpush1.bf16.msra.mxu1 %v3020_v22  ;;  %v3172_v22 = vld [vmem:[%s3477_s2 + $0x88] ss:$16 sps:$4 sm:$0xff]  }
 0x1c6   :  { %1831 = vmatprep.subr.bf16.mxu1 %v2380_v41  ;;  %v3178_v41 = vld [vmem:[%s3477_s2 + $0xac] ss:$16 sps:$4 sm:$0xff]  }
 0x1c9   :  { %1832 = vmatpush1.bf16.msra.mxu1 %v2378_v3  ;;  %v3184_v3 = vld [vmem:[%s3477_s2 + $0xa8] ss:$16 sps:$4 sm:$0xff]  }
 0x1ca   :  { %1842 = vmatprep.subr.bf16.mxu1 %v2383_v4  ;;  %v3190_v4 = vld [vmem:[%s3477_s2 + $0xcc] ss:$16 sps:$4 sm:$0xff]  }
 0x21f   :  { %v446_v44 = vpop.f32.mrb[0].mxu1 }
 0x220   :  { %v448_v45 = vpop.f32.mrb[1].mxu1  ;;  %v3124_v55 = vpack.c.bf16 %v446_v44, %v446_v44  ;;  %v3250_v44 = vld [vmem:[%s3477_s2 + $0x16c] ss:$16 sps:$4 sm:$0xff]  }
 0x221   :  { %v454_v49 = vpack.c.bf16 %v448_v45, %v448_v45  ;;  %v450_v50 = vpop.f32.mrb[2].mxu1  ;;  %3521 = vst [vmem:[#allocation19_spill] sm:$0xff] %v3250_v44  ;;  %v3256_v45 = vld [vmem:[%s3477_s2 + $0x168] ss:$16 sps:$4 sm:$0xff]  }
 0x222   :  { %v451_v58 = vpop.f32.mrb[3].mxu1  ;;  %3522 = vst [vmem:[#allocation20_spill] sm:$0xff] %v3256_v45 }
 0x223   :  { %893 = vmatprep.mubr.bf16.mxu0 %v454_v49  ;;  %v3268_v58 = vld [vmem:[%s3477_s2 + $0x188] ss:$16 sps:$4 sm:$0xff]  }
 0x224   :  { %894 = vmatmul.mubr.bf16.vlgmr.msra.gmra.mrb[4].mxu0 %v3124_v55  ;;  %3524 = vst [vmem:[#allocation22_spill] sm:$0xff] %v3268_v58 }
 0x225   :  { %903 = vmatpush1.bf16.msra.mxu0 %v3122_v54  ;;  %934 = vmatprep.mubr.bf16.mxu0 %v454_v49  ;;  %v3262_v49 = vld [vmem:[%s3477_s2 + $0x18c] ss:$16 sps:$4 sm:$0xff]  }
 0x226   :  { %904 = vmatprep.subr.bf16.mxu0 %v3129_v59  ;;  %3523 = vst [vmem:[#allocation21_spill] sm:$0xff] %v3262_v49 }
 0x229   :  { %905 = vmatpush1.bf16.msra.mxu0 %v3136_v62 }
 0x22a   :  { %906 = vmatprep.subr.bf16.mxu0 %v3142_v63 }
 0x22d   :  { %907 = vmatpush1.bf16.msra.mxu0 %v3148_v2 }
 0x22e   :  { %908 = vmatprep.subr.bf16.mxu0 %v3154_v8 }
 0x231   :  { %909 = vmatpush1.bf16.msra.mxu0 %v3160_v13 }
 0x232   :  { %910 = vmatprep.subr.bf16.mxu0 %v3166_v14 }
 0x235   :  { %911 = vmatpush1.bf16.msra.mxu0 %v3172_v22 }
 0x236   :  { %912 = vmatprep.subr.bf16.mxu0 %v3178_v41 }
 0x239   :  { %913 = vmatpush1.bf16.msra.mxu0 %v3184_v3 }
 0x23a   :  { %914 = vmatprep.subr.bf16.mxu0 %v3190_v4 }
 0x23d   :  { %915 = vmatpush1.bf16.msra.mxu0 %v3196_v6 }
 0x23e   :  { %916 = vmatprep.subr.bf16.mxu0 %v3202_v7 }
 0x241   :  { %917 = vmatpush1.bf16.msra.mxu0 %v3208_v12 }
 0x242   :  { %918 = vmatprep.subr.bf16.mxu0 %v3214_v16 }
 0x245   :  { %919 = vmatpush1.bf16.msra.mxu0 %v3220_v25 }
 0x246   :  { %920 = vmatprep.subr.bf16.mxu0 %v3226_v30 }
 0x249   :  { %921 = vmatpush1.bf16.msra.mxu0 %v3232_v23 }
 0x24a   :  { %922 = vmatprep.subr.bf16.mxu0 %v3238_v34 }
 0x24c   :  { %v989_v50 = vpop.xlane.xlu1 %988 }
 0x24d   :  { %923 = vmatpush1.bf16.msra.mxu0 %v3244_v38  ;;  %v3274_v38 = vld [vmem:[%s3477_s2 + $0x1ac] ss:$16 sps:$4 sm:$0xff]  }
 0x24e   :  { %924 = vmatprep.subr.bf16.mxu0 %v3250_v44  ;;  %3525 = vst [vmem:[#allocation23_spill] sm:$0xff] %v3274_v38  ;;  %v990_v44 = vsub.f32 %v3110_v37, %v989_v50  ;;  %v3293_v37 = vld [vmem:[%s3477_s2 + $0x1c8] ss:$16 sps:$4 sm:$0xff]   ;;  %v3299_v50 = vld [vmem:[%s3477_s2 + $0x1ec] ss:$16 sps:$4 sm:$0xff]  }
 0x24f   :  { %3528 = vst [vmem:[#allocation26_spill] sm:$0xff] %v3293_v37  ;;  %3529 = vst [vmem:[#allocation27_spill] sm:$0xff] %v3299_v50 }
 0x250   :  { %v991_v34 = vmul.f32 1.442695, %v990_v44  ;;  %v3305_v44 = vld [vmem:[%s3477_s2 + $0x1e8] ss:$16 sps:$4 sm:$0xff]  }
 0x251   :  { %925 = vmatpush1.bf16.msra.mxu0 %v3256_v45  ;;  %v3281_v45 = vld [vmem:[%s3477_s2 + $0x1a8] ss:$16 sps:$4 sm:$0xff]   ;;  %3530 = vst [vmem:[#allocation28_spill] sm:$0xff] %v3305_v44 }
 0x252   :  { %926 = vmatprep.subr.bf16.mxu0 %v3262_v49  ;;  %3526 = vst [vmem:[#allocation24_spill] sm:$0xff] %v3281_v45  ;;  %v3287_v49 = vld [vmem:[%s3477_s2 + $0x1cc] ss:$16 sps:$4 sm:$0xff]   ;;  %2437 = vpow2.f32 %v991_v34 }
 0x253   :  { %3527 = vst [vmem:[#allocation25_spill] sm:$0xff] %v3287_v49 }
 0x255   :  { %927 = vmatpush1.bf16.msra.mxu0 %v3268_v58 }
 0x256   :  { %928 = vmatprep.subr.bf16.mxu0 %v3274_v38 }
 0x259   :  { %929 = vmatpush1.bf16.msra.mxu0 %v3281_v45 }
 0x25a   :  { %930 = vmatprep.subr.bf16.mxu0 %v3287_v49 }
 0x25d   :  { %931 = vmatpush1.bf16.msra.mxu0 %v3293_v37 }
 0x25e   :  { %932 = vmatprep.subr.bf16.mxu0 %v3299_v50 }
 0x25f   :  { %v1252_v45 = vpop.f32.mrb[4].mxu1 }
 0x260   :  { %v1253_v38 = vadd.f32 %v1252_v45, %v2674_v43  ;;  %v1254_v58 = vpop.f32.mrb[5].mxu1 }
 0x261   :  { %v1255_v49 = vadd.f32 %v1254_v58, %v2674_v43  ;;  %933 = vmatpush1.bf16.msra.mxu0 %v3305_v44  ;;  %v1256_v23 = vpop.f32.mrb[6].mxu1  ;;  %v3318_v58 = vpop.eup %2437 }
 0x262   :  { %v1259_v30 = vmax.f32 %v1253_v38, 0.0  ;;  %v1914_v34 = vsel %vm975_vm1, %v1253_v38, 0.0  ;;  %2150 = vmatprep.subr.msk.bf16.mxu0 %vm360_vm0, %v2671_v42  ;;  %v1257_v37 = vpop.f32.mrb[7].mxu1 }
 0x263   :  { %v1260_v25 = vmax.f32 %v1255_v49, 0.0  ;;  %v1915_v16 = vsel %vm977_vm2, %v1255_v49, 0.0  ;;  %v993_v37 = vsel %vm986_vm5, %v3318_v58, 0.0 }
 0x264   :  { %v1261_v50 = vmul.f32 %v1259_v30, %v2677_v47  ;;  %935 = vmatmul.mubr.bf16.vlgmr.msra.gmra.mrb[8].mxu0 %v3124_v55  ;;  %v1916_v45 = vadd.f32 %v1915_v16, %v1914_v34 }
 0x265   :  { %v1262_v43 = vmul.f32 %v1260_v25, %v2677_v47 }
 0x266   :  { %v1263_v23 = vadd.f32 %v1261_v50, %v2681_v53  ;;  %1917 = vadd.xlane.f32.xlu0 %v1916_v45 }
 0x267   :  { %v1264_v38 = vadd.f32 %v1262_v43, %v2681_v53 }
 0x268   :  { %v2147_v44 = vmul.f32 -1.442695, %v1263_v23 }
 0x269   :  { %v2148_v42 = vmul.f32 -1.442695, %v1264_v38 }
 0x26a   :  { %2439 = vpow2.f32 %v2147_v44  ;;  %1353 = vmatpush1.bf16.xpose.msra.mxu0 %v2732_v20  ;;  %994 = vadd.xlane.f32.xlu0 %v993_v37 }
 0x26b   :  { %2441 = vpow2.f32 %v2148_v42  ;;  %2151 = vmatprep.subr.msk.bf16.mxu0 %vm360_vm0, %v2742_v24 }
 0x272   :  { %1355 = vmatpush1.bf16.xpose.msra.mxu0 %v2767_v28 }
 0x273   :  { %2152 = vmatprep.subr.msk.bf16.mxu0 %vm360_vm0, %v2774_v29 }
 0x274   :  { %v2440_v47 = vpop.eup %2439 }
 0x275   :  { %v2442_v53 = vpop.eup %2441  ;;  %v1271_v55 = vadd.f32 1.0, %v2440_v47 }
 0x276   :  { %v1272_v16 = vadd.f32 1.0, %v2442_v53 }
 0x277   :  { %2443 = vrcp.f32 %v1271_v55 }
 0x278   :  { %2445 = vrcp.f32 %v1272_v16 }
 0x27a   :  { %1357 = vmatpush1.bf16.xpose.msra.mxu0 %v2792_v31  ;;  %v3532_v31 = vld [vmem:[#allocation10_spill] sm:$0xff] }
 0x27b   :  { %2153 = vmatprep.subr.msk.bf16.mxu0 %vm360_vm0, %v2798_v32  ;;  %v3533_v32 = vld [vmem:[#allocation11_spill] sm:$0xff] }
 0x281   :  { %v2444_v20 = vpop.eup %2443 }
 0x282   :  { %v2446_v25 = vpop.eup %2445  ;;  %1359 = vmatpush1.bf16.xpose.msra.mxu0 %v2816_v35  ;;  %v3534_v35 = vld [vmem:[#allocation12_spill] sm:$0xff] }
 0x283   :  { %v1279_v24 = vcombine.low %v2444_v20, %v2446_v25  ;;  %2154 = vmatprep.subr.msk.bf16.mxu0 %vm360_vm0, %v2822_v36  ;;  %v1298_v28 = vadd.f32 1.0, %v2446_v25  ;;  %v1297_v36 = vadd.f32 1.0, %v2444_v20 }
 0x285   :  { %v1286_v29 = vrot.slane %v1279_v24, %v2585_v18  ;;  %v1300_v30 = vpack.c.bf16 %v1298_v28, %v1298_v28 }
 0x287   :  { %v1293_v49 = vrot.slane %v1286_v29, %v2585_v18  ;;  %2166 = vmatprep.mubr.msk.bf16.mxu0 %vm360_vm0, %v1300_v30 }
 0x289   :  { %2149 = vst.msk [vmem:[%s3482_s7 + $0x2] sm:$0x3] %vm2735_vm3, %v1293_v49 }
 0x28a   :  { %1361 = vmatpush1.bf16.xpose.msra.mxu0 %v2840_v39  ;;  %v1299_v39 = vpack.c.bf16 %v1297_v36, %v1297_v36 }
 0x28b   :  { %2155 = vmatprep.subr.msk.bf16.mxu0 %vm360_vm0, %v2846_v40  ;;  %v3535_v40 = vld [vmem:[#allocation8_spill] sm:$0xff] }
 0x28c   :  { %v855_v45 = vsub.s32 3, %v3535_v40 }
 0x292   :  { %1363 = vmatpush1.bf16.xpose.msra.mxu0 %v2864_v46  ;;  %v843_v46 = vsub.s32 0, %v3535_v40 }
 0x293   :  { %2156 = vmatprep.subr.msk.bf16.mxu0 %vm360_vm0, %v2870_v48  ;;  %v519_v48 = vld [vmem:[%s3478_s3] sm:$0xf] }
 0x29a   :  { %1365 = vmatpush1.bf16.xpose.msra.mxu0 %v2888_v51 }
 0x29b   :  { %2157 = vmatprep.subr.msk.bf16.mxu0 %vm360_vm0, %v2894_v52 }
 0x2a2   :  { %1367 = vmatpush1.bf16.xpose.msra.mxu0 %v2912_v56  ;;  %v844_v56 = vrot.slane %v519_v48, %v843_v46 }
 0x2a3   :  { %2158 = vmatprep.subr.msk.bf16.mxu0 %vm360_vm0, %v2918_v57 }
 0x2aa   :  { %1369 = vmatpush1.bf16.xpose.msra.mxu0 %v2936_v60 }
 0x2ab   :  { %2159 = vmatprep.subr.msk.bf16.mxu0 %vm360_vm0, %v2942_v61 }
 0x2b2   :  { %1371 = vmatpush1.bf16.xpose.msra.mxu0 %v2960_v0 }
 0x2b3   :  { %2160 = vmatprep.subr.msk.bf16.mxu0 %vm360_vm0, %v2966_v1 }
 0x2ba   :  { %1373 = vmatpush1.bf16.xpose.msra.mxu0 %v2984_v10 }
 0x2bb   :  { %2161 = vmatprep.subr.msk.bf16.mxu0 %vm360_vm0, %v2990_v11 }
 0x2c2   :  { %1375 = vmatpush1.bf16.xpose.msra.mxu0 %v3531_v21 }
 0x2c3   :  { %2162 = vmatprep.subr.msk.bf16.mxu0 %vm360_vm0, %v3532_v31 }
 0x2ca   :  { %1377 = vmatpush1.bf16.xpose.msra.mxu0 %v3533_v32 }
 0x2cb   :  { %2163 = vmatprep.subr.msk.bf16.mxu0 %vm360_vm0, %v3534_v35 }
 0x2d2   :  { %1379 = vmatpush1.bf16.xpose.msra.mxu0 %v3040_v15  ;;  %v847_v15 = vsub.s32 1, %v3535_v40 }
 0x2d3   :  { %2164 = vmatprep.subr.msk.bf16.mxu0 %vm360_vm0, %v3046_v19 }
 0x2d4   :  { %v848_v57 = vrot.slane %v519_v48, %v847_v15 }
 0x2da   :  { %1381 = vmatpush1.bf16.xpose.msra.mxu0 %v3052_v17 }
 0x2db   :  { %2165 = vmatprep.subr.msk.bf16.mxu0 %vm360_vm0, %v3058_v26 }
 0x2e2   :  { %1383 = vmatpush1.bf16.xpose.msra.mxu0 %v3064_v9 }
 0x2e9   :  { %1385 = vmatmul.mubr.bf16.vlgmr.msra.gmra.mrb[12].mxu0 %v1299_v39 }
 0x2f3   :  { %v1918_v51 = vpop.xlane.xlu0 %1917 }
 0x2f4   :  { %v1919_v52 = vmul.f32 0.0051020407, %v1918_v51 }
 0x2f6   :  { %v1920_v9 = vmul.f32 %v1919_v52, %v3102_v27  ;;  %v851_v27 = vsub.s32 2, %v3535_v40 }
 0x2f7   :  { %v995_v60 = vpop.xlane.xlu0 %994  ;;  %v895_v61 = vpop.f32.mrb[4].mxu0 }
 0x2f8   :  { %2447 = vrcp.f32 %v995_v60  ;;  %v896_v0 = vadd.f32 %v895_v61, %v844_v56  ;;  %v897_v1 = vpop.f32.mrb[5].mxu0  ;;  %v1921_v10 = vadd.f32 %v1920_v9, %v3104_v33  ;;  %v852_v43 = vrot.slane %v519_v48, %v851_v27 }
 0x2f9   :  { %v898_v11 = vadd.f32 %v897_v1, %v848_v57  ;;  %v899_v17 = vpop.f32.mrb[6].mxu0  ;;  %v856_v33 = vrot.slane %v519_v48, %v855_v45  ;;  %v3553_v48 = vld [vmem:[#allocation28_spill] sm:$0xff] }
 0x2fa   :  { %v900_v19 = vpop.f32.mrb[7].mxu0  ;;  %v1922_v26 = vsel %vm986_vm5, %v1921_v10, -inf }
 0x2fb   :  { %v947_v50 = vcombine.low %v896_v0, %v898_v11  ;;  %1923 = vmax.xlane.f32.xlu1 %v1922_v26 }
 0x302   :  { %v2448_v44 = vpop.eup %2447 }
 0x303   :  { %v997_v34 = vmul.f32 %v2448_v44, %v3318_v58  ;;  %v955_v58 = vrot.slane %v947_v50, %v2585_v18 }
 0x305   :  { %998 = vst.msk [vmem:[#allocation5] sm:$0x1] %vm986_vm5, %v997_v34 }
 0x337   :  { %v936_v23 = vpop.f32.mrb[8].mxu0 }
 0x338   :  { %v937_v38 = vadd.f32 %v936_v23, %v852_v43  ;;  %v938_v42 = vpop.f32.mrb[9].mxu0 }
 0x339   :  { %v939_v37 = vadd.f32 %v938_v42, %v856_v33  ;;  %v940_v47 = vpop.f32.mrb[10].mxu0 }
 0x33a   :  { %v941_v53 = vpop.f32.mrb[11].mxu0 }
 0x33b   :  { %v948_v55 = vcombine.low %v937_v38, %v939_v37 }
 0x33d   :  { %v962_v16 = vrot.slane %v948_v55, %v2585_v18 }
 0x33f   :  { %v963_v20 = vcombine.low %v955_v58, %v962_v16 }
 0x341   :  { %v970_v24 = vrot.slane %v963_v20, %v2585_v18 }
 0x343   :  { %974 = vst.msk [vmem:[%s3480_s5] sm:$0xf] %vm3401_vm6, %v970_v24 }
 0x388   :  { %v1924_v28 = vpop.xlane.xlu1 %1923 }
 0x389   :  { %v1925_v29 = vsub.f32 %v1921_v10, %v1924_v28 }
 0x38b   :  { %v1926_v30 = vmul.f32 1.442695, %v1925_v29 }
 0x38d   :  { %2449 = vpow2.f32 %v1926_v30 }
 0x397   :  { %v2450_v49 = vpop.eup %2449 }
 0x398   :  { %v1928_v21 = vsel %vm986_vm5, %v2450_v49, 0.0 }
 0x399   :  { %1929 = vadd.xlane.f32.xlu1 %v1928_v21 }
 0x3bc   :  { %v1386_v5 = vpop.f32.mrb[12].mxu0 }
 0x3bd   :  { %v1388_v31 = vpop.f32.mrb[13].mxu0  ;;  %v1393_v36 = vpack.c.bf16 %v1386_v5, %v1386_v5 }
 0x3be   :  { %v1394_v32 = vpack.c.bf16 %v1388_v31, %v1388_v31  ;;  %v1390_v35 = vpop.f32.mrb[14].mxu0 }
 0x3bf   :  { %v1391_v39 = vpop.f32.mrb[15].mxu0 }
 0x3c0   :  { %1833 = vmatprep.mubr.bf16.mxu1 %v1394_v32 }
 0x3c1   :  { %1834 = vmatmul.mubr.bf16.vlgmr.msra.gmra.mrb[8].mxu1 %v1393_v36 }
 0x3c2   :  { %1843 = vmatpush1.bf16.msra.mxu1 %v3122_v54  ;;  %1874 = vmatprep.mubr.bf16.mxu1 %v1394_v32  ;;  %v3538_v54 = vld [vmem:[#allocation13_spill] sm:$0xff] }
 0x3c3   :  { %1844 = vmatprep.subr.bf16.mxu1 %v3129_v59  ;;  %v3539_v59 = vld [vmem:[#allocation14_spill] sm:$0xff] }
 0x3c6   :  { %1845 = vmatpush1.bf16.msra.mxu1 %v3136_v62  ;;  %v3540_v62 = vld [vmem:[#allocation15_spill] sm:$0xff] }
 0x3c7   :  { %1846 = vmatprep.subr.bf16.mxu1 %v3142_v63  ;;  %v3541_v63 = vld [vmem:[#allocation16_spill] sm:$0xff] }
 0x3ca   :  { %1847 = vmatpush1.bf16.msra.mxu1 %v3148_v2  ;;  %v3542_v2 = vld [vmem:[#allocation17_spill] sm:$0xff] }
 0x3cb   :  { %1848 = vmatprep.subr.bf16.mxu1 %v3154_v8  ;;  %v3543_v8 = vld [vmem:[#allocation18_spill] sm:$0xff] }
 0x3ce   :  { %1849 = vmatpush1.bf16.msra.mxu1 %v3160_v13  ;;  %v3544_v13 = vld [vmem:[#allocation19_spill] sm:$0xff] }
 0x3cf   :  { %1850 = vmatprep.subr.bf16.mxu1 %v3166_v14  ;;  %v3545_v14 = vld [vmem:[#allocation20_spill] sm:$0xff] }
 0x3d2   :  { %1851 = vmatpush1.bf16.msra.mxu1 %v3172_v22  ;;  %v3546_v22 = vld [vmem:[#allocation21_spill] sm:$0xff] }
 0x3d3   :  { %1852 = vmatprep.subr.bf16.mxu1 %v3178_v41  ;;  %v3547_v41 = vld [vmem:[#allocation22_spill] sm:$0xff] }
 0x3d6   :  { %1853 = vmatpush1.bf16.msra.mxu1 %v3184_v3  ;;  %v3548_v3 = vld [vmem:[#allocation23_spill] sm:$0xff] }
 0x3d7   :  { %1854 = vmatprep.subr.bf16.mxu1 %v3190_v4  ;;  %v3549_v4 = vld [vmem:[#allocation24_spill] sm:$0xff] }
 0x3da   :  { %1855 = vmatpush1.bf16.msra.mxu1 %v3196_v6  ;;  %v3550_v6 = vld [vmem:[#allocation25_spill] sm:$0xff] }
 0x3db   :  { %1856 = vmatprep.subr.bf16.mxu1 %v3202_v7  ;;  %v3551_v7 = vld [vmem:[#allocation26_spill] sm:$0xff] }
 0x3de   :  { %1857 = vmatpush1.bf16.msra.mxu1 %v3208_v12  ;;  %v3552_v12 = vld [vmem:[#allocation27_spill] sm:$0xff] }
 0x3df   :  { %1858 = vmatprep.subr.bf16.mxu1 %v3538_v54 }
 0x3e2   :  { %1859 = vmatpush1.bf16.msra.mxu1 %v3539_v59 }
 0x3e3   :  { %1860 = vmatprep.subr.bf16.mxu1 %v3540_v62 }
 0x3e6   :  { %1861 = vmatpush1.bf16.msra.mxu1 %v3541_v63 }
 0x3e7   :  { %1862 = vmatprep.subr.bf16.mxu1 %v3542_v2 }
 0x3ea   :  { %1863 = vmatpush1.bf16.msra.mxu1 %v3543_v8 }
 0x3eb   :  { %1864 = vmatprep.subr.bf16.mxu1 %v3544_v13 }
 0x3ee   :  { %1865 = vmatpush1.bf16.msra.mxu1 %v3545_v14 }
 0x3ef   :  { %1866 = vmatprep.subr.bf16.mxu1 %v3546_v22 }
 0x3f2   :  { %1867 = vmatpush1.bf16.msra.mxu1 %v3547_v41 }
 0x3f3   :  { %1868 = vmatprep.subr.bf16.mxu1 %v3548_v3 }
 0x3f6   :  { %1869 = vmatpush1.bf16.msra.mxu1 %v3549_v4 }
 0x3f7   :  { %1870 = vmatprep.subr.bf16.mxu1 %v3550_v6 }
 0x3fa   :  { %1871 = vmatpush1.bf16.msra.mxu1 %v3551_v7 }
 0x3fb   :  { %1872 = vmatprep.subr.bf16.mxu1 %v3552_v12 }
 0x3fe   :  { %1873 = vmatpush1.bf16.msra.mxu1 %v3553_v48 }
 0x401   :  { %1875 = vmatmul.mubr.bf16.vlgmr.msra.gmra.mrb[12].mxu1 %v1393_v36 }
 0x426   :  { %v1930_v51 = vpop.xlane.xlu1 %1929 }
 0x427   :  { %2451 = vrcp.f32 %v1930_v51 }
 0x431   :  { %v2452_v52 = vpop.eup %2451 }
 0x432   :  { %v1932_v56 = vmul.f32 %v2452_v52, %v2450_v49 }
 0x434   :  { %1934 = vst.msk [vmem:[#allocation5 + $0x1] sm:$0x1] %vm986_vm5, %v1932_v56 }
 0x435   :  { %2476 = shalt.err (!%p2473_p9)
}
 0x436   :  { %s2477_s27 = scalar_lea.hbm %s3481_s6, 32 }
 0x437   :  { %p2478_p10 = scmp.ne.s32.totalorder %s3481_s6, %s2477_s27  ;;  %p2481_p11 = scmp.lt.u32.totalorder %s2477_s27, %s3481_s6 }
 0x439   :  { %p2483_p12 = pnand %p2481_p11, %p2478_p10 }
 0x43b   :  { %2486 = shalt.err (!%p2483_p12)
}
 0x43c   :  { %s2494_s9 = smov 16   ;;  %s2495_s4 = smov 1   ;;  %v1459_v57 = vld [vmem:[%s3478_s3] sm:$0xf] }
 0x43d   :  { %1948 = dma.vmem_to_hbm [thread:$0]  %s1943_s24, 32, %s3481_s6, [#allocation3], %s2494_s9, %s2494_s9, %s2495_s4   ;;  %v1784_v9 = vrot.slane %v1459_v57, %v843_v46  ;;  %v1788_v60 = vrot.slane %v1459_v57, %v847_v15  ;;  %v1792_v26 = vrot.slane %v1459_v57, %v851_v27  ;;  %v1796_v50 = vrot.slane %v1459_v57, %v855_v45 }
 0x494   :  { %v1835_v61 = vpop.f32.mrb[8].mxu1 }
 0x495   :  { %v1836_v0 = vadd.f32 %v1835_v61, %v1784_v9  ;;  %v1837_v1 = vpop.f32.mrb[9].mxu1 }
 0x496   :  { %v1838_v10 = vadd.f32 %v1837_v1, %v1788_v60  ;;  %v1839_v11 = vpop.f32.mrb[10].mxu1 }
 0x497   :  { %v1840_v17 = vpop.f32.mrb[11].mxu1 }
 0x498   :  { %v1887_v19 = vcombine.low %v1836_v0, %v1838_v10 }
 0x49a   :  { %v1895_v38 = vrot.slane %v1887_v19, %v2585_v18 }
 0x4d4   :  { %v1876_v44 = vpop.f32.mrb[12].mxu1 }
 0x4d5   :  { %v1877_v34 = vadd.f32 %v1876_v44, %v1792_v26  ;;  %v1878_v43 = vpop.f32.mrb[13].mxu1 }
 0x4d6   :  { %v1879_v46 = vadd.f32 %v1878_v43, %v1796_v50  ;;  %v1880_v33 = vpop.f32.mrb[14].mxu1 }
 0x4d7   :  { %v1881_v23 = vpop.f32.mrb[15].mxu1 }
 0x4d8   :  { %v1888_v15 = vcombine.low %v1877_v34, %v1879_v46 }
 0x4da   :  { %v1902_v42 = vrot.slane %v1888_v15, %v2585_v18 }
 0x4dc   :  { %v1903_v37 = vcombine.low %v1895_v38, %v1902_v42 }
 0x4de   :  { %v1910_v47 = vrot.slane %v1903_v37, %v2585_v18 }
 0x4e0   :  { %2231 = vst.msk [vmem:[%s3480_s5 + $0x4] sm:$0xf] %vm3401_vm6, %v1910_v47 }
 0x4e1   :  { %2489 = dma.done.wait [#allocation3], 32  }
 0x4e2   :  { %2490 = vsyncadd [#allocation3], 4294967264 }
 0x4e3   :  { %1958 = vsyncpa [#allocation3], 1 }
 0x4e4   :  { %1959 = vsyncpa [#allocation4], 1 }

</bundles_post_ra>
